<compile_context>
chip_gen: v7x
topology: tpu7x:2x2x1
jax: 0.10.0
libtpu: 0.0.40
codegen_flags: <defaults>
</compile_context>

<pallas_src>
import functools

import jax
import jax.numpy as jnp
import numpy as np
from jax.experimental import pallas as pl
from jax.experimental.pallas import tpu as pltpu


def _round_up(x, m):
    return ((x + m - 1) // m) * m


# ----------------------------- fused Pallas kernel ---------------------------

def _actor_fused_kernel(x_ref, wk_ref, bconv_ref, w1_ref, b1_ref, w2_ref, b2_ref,
                        out_ref, conv_scratch, *, OH, KH):
    # x_ref:        (H, TILE_B, W*C)      observations, batch dense in sublanes
    # wk_ref:       (KH, W*C, OW*F)       banded conv weights (kw folded in)
    # bconv_ref:    (1, OW*F)             conv bias tiled over (ow, co) columns
    # w1_ref:       (OH*OW*F, HID)        fc1 weights, flattened to kernel layout
    # b1_ref:       (1, HID)
    # w2_ref:       (HID, N_PAD)          fc_logits weights, lane-padded to 128
    # b2_ref:       (1, N_PAD)
    # out_ref:      (TILE_B, N_PAD)       lane-dense f32 logits slab
    # conv_scratch: (TILE_B, OH*OW*F)     VMEM scratch holding the conv activation
    tile_b = out_ref.shape[0]
    conv_cols = wk_ref.shape[2]                       # OW * F (128 for MinAtar)

    # Hoisted bias broadcast (JAX does not CSE broadcast_in_dim inside the loop).
    bconv = jnp.broadcast_to(bconv_ref[...], (tile_b, conv_cols))

    for oh in range(OH):
        acc = jnp.zeros((tile_b, conv_cols), jnp.float32)
        for kh in range(KH):
            row = x_ref[oh + kh]                      # (TILE_B, W*C) contiguous read
            acc = acc + jnp.dot(row, wk_ref[kh],
                                preferred_element_type=jnp.float32)
        conv_row = jnp.maximum(acc + bconv, 0.0)      # (TILE_B, OW*F)
        # 128-aligned static lane slice -> unmasked stores; conv act never hits HBM.
        conv_scratch[:, oh * conv_cols:(oh + 1) * conv_cols] = (
            conv_row.astype(conv_scratch.dtype))

    # fc1: single K = OH*OW*F matmul, f32 accumulation.
    h = jnp.maximum(
        jnp.dot(conv_scratch[...], w1_ref[...], preferred_element_type=jnp.float32)
        + b1_ref[...], 0.0)                           # (TILE_B, HID)

    logits = jnp.dot(h.astype(w2_ref.dtype), w2_ref[...],
                     preferred_element_type=jnp.float32) + b2_ref[...]
    out_ref[...] = logits


# -------------------------- one-time parameter prep --------------------------

def prepare_actor_params(params, obs_shape, n_actions, compute_dtype=jnp.bfloat16):
    """Hoisted weight transforms (run once, not per forward)."""
    C, H, W = obs_shape
    KH = KW = 3
    OH, OW = H - KH + 1, W - KW + 1

    wc = params["wc"].astype(jnp.float32)      # (F, C, KH, KW)
    bc = params["bc"].astype(jnp.float32)      # (F,)
    w1 = params["w1"].astype(jnp.float32)      # (HID, F*OH*OW)  PyTorch NCHW-flatten cols
    b1 = params["b1"].astype(jnp.float32)      # (HID,)
    w2 = params["w2"].astype(jnp.float32)      # (n_act, HID)
    b2 = params["b2"].astype(jnp.float32)      # (n_act,)

    F_ = wc.shape[0]
    HID = w1.shape[0]

    # Banded conv weights (kw folded in):
    #   wk[kh, w*C + c, ow*F + co] = wc[co, c, kh, w - ow]   if 0 <= w - ow < KW
    base = wc.transpose(2, 3, 1, 0)                               # (KH, KW, C, F)
    wk = jnp.zeros((KH, W * C, OW * F_), jnp.float32)
    for kw in range(KW):
        for ow in range(OW):
            w_idx = ow + kw
            wk = wk.at[:, w_idx * C:(w_idx + 1) * C,
                       ow * F_:(ow + 1) * F_].set(base[:, kw])

    # Conv bias broadcast over the (ow, co) column layout.
    bconv = jnp.tile(bc, OW).reshape(1, OW * F_)

    # fc1 weights flattened so kernel scratch column oh*OW*F + ow*F + co matches
    # PyTorch's NCHW flatten column co*OH*OW + oh*OW + ow.
    w1_flat = w1.reshape(HID, F_, OH, OW).transpose(2, 3, 1, 0).reshape(OH * OW * F_, HID)
    b1r = b1.reshape(1, HID)

    # Lane-dense logits: pad n_act up to a multiple of 128.
    n_pad = max(128, _round_up(n_actions, 128))
    w2p = jnp.zeros((HID, n_pad), jnp.float32).at[:, :n_actions].set(w2.T)
    b2p = jnp.zeros((1, n_pad), jnp.float32).at[0, :n_actions].set(b2)

    arrays = dict(
        wk=wk.astype(compute_dtype),           # MXU operand
        bconv=bconv,                           # bias / ReLU math stays f32
        w1_flat=w1_flat.astype(compute_dtype),  # MXU operand
        b1=b1r,
        w2p=w2p.astype(compute_dtype),         # MXU operand
        b2p=b2p,
    )
    meta = dict(C=C, H=H, W=W, F=F_, KH=KH, KW=KW, OH=OH, OW=OW,
                HID=HID, n_act=n_actions, n_pad=n_pad, compute_dtype=compute_dtype)
    return arrays, meta


# --------------------------------- wrapper -----------------------------------

def actor_forward(x, arrays, meta, *, tile_b=None, tile_b_cap=256):
    """logits = fc_logits(relu(fc1(relu(flatten(conv(x)))))) — fused Pallas kernel."""
    C, H, W = meta["C"], meta["H"], meta["W"]
    OH, OW, KH, F_ = meta["OH"], meta["OW"], meta["KH"], meta["F"]
    HID, n_pad = meta["HID"], meta["n_pad"]
    cdt = meta["compute_dtype"]
    conv_cols = OW * F_

    B = x.shape[0]
    if tile_b is None:
        # Adapt to B: don't compute padded garbage rows for tiny batches, but use
        # MXU-width tiles (cap 256; use 128 for v5e if desired) for RL-scale batches.
        tile_b = min(_round_up(max(B, 1), 8), tile_b_cap)
    b_pad = _round_up(B, tile_b)

    # Layout plumbing only: NCHW -> (H, B, W*C). Batch dense in sublanes, each
    # conv input row is a contiguous leading-axis slice in the kernel.
    x3 = x.astype(jnp.float32).transpose(2, 0, 3, 1).reshape(H, B, W * C).astype(cdt)
    if b_pad != B:
        x3 = jnp.pad(x3, ((0, 0), (0, b_pad - B), (0, 0)))

    kernel = functools.partial(_actor_fused_kernel, OH=OH, KH=KH)

    flops = 2 * b_pad * (OH * KH * (W * C) * conv_cols
                         + OH * conv_cols * HID
                         + HID * n_pad)
    bytes_accessed = (x3.size * x3.dtype.itemsize
                      + sum(int(a.size) * a.dtype.itemsize for a in arrays.values())
                      + b_pad * n_pad * 4)

    out = pl.pallas_call(
        kernel,
        out_shape=jax.ShapeDtypeStruct((b_pad, n_pad), jnp.float32),
        grid=(b_pad // tile_b,),
        in_specs=[
            pl.BlockSpec((H, tile_b, W * C), lambda i: (0, i, 0)),      # x tile
            pl.BlockSpec((KH, W * C, conv_cols), lambda i: (0, 0, 0)),  # conv weights
            pl.BlockSpec((1, conv_cols), lambda i: (0, 0)),             # conv bias
            pl.BlockSpec((OH * conv_cols, HID), lambda i: (0, 0)),      # fc1 weights
            pl.BlockSpec((1, HID), lambda i: (0, 0)),                   # fc1 bias
            pl.BlockSpec((HID, n_pad), lambda i: (0, 0)),               # fc_logits W
            pl.BlockSpec((1, n_pad), lambda i: (0, 0)),                 # fc_logits b
        ],
        out_specs=pl.BlockSpec((tile_b, n_pad), lambda i: (i, 0)),
        scratch_shapes=[pltpu.VMEM((tile_b, OH * conv_cols), cdt)],     # conv activation
        compiler_params=pltpu.CompilerParams(dimension_semantics=("parallel",)),
        cost_estimate=pl.CostEstimate(flops=flops, transcendentals=0,
                                      bytes_accessed=bytes_accessed),
    )(x3, arrays["wk"], arrays["bconv"], arrays["w1_flat"],
      arrays["b1"], arrays["w2p"], arrays["b2p"])

    return out[:B, :meta["n_act"]]


# --------------------------- pure-JAX reference -------------------------------

def actor_forward_ref(x, params):
    wc, bc, w1, b1, w2, b2 = (params[k] for k in ("wc", "bc", "w1", "b1", "w2", "b2"))
    conv = jax.lax.conv_general_dilated(
        x.astype(jnp.float32), wc, window_strides=(1, 1), padding="VALID",
        dimension_numbers=("NCHW", "OIHW", "NCHW"))
    conv = conv + bc.reshape(1, -1, 1, 1)
    h = jnp.maximum(conv.reshape(x.shape[0], -1), 0.0)     # NCHW flatten + ReLU
    h = jnp.maximum(h @ w1.T + b1, 0.0)
    return h @ w2.T + b2


# ------------------------------------ main ------------------------------------

if __name__ == "__main__":
    # Small MinAtar-like shapes: 4 channels, 10x10 board, 6 discrete actions.
    B, C, H, W = 2, 4, 10, 10
    KH = KW = 3
    OH, OW = H - KH + 1, W - KW + 1
    out_dim = 16 * OH * OW
    n_act = 6

    key = jax.random.PRNGKey(0)
    kx, kc, k1, k2, kb = jax.random.split(key, 5)

    # Deterministic parameter init mirroring layer_init (kaiming_normal_, zero bias).
    params = {
        "wc": jax.random.normal(kc, (16, C, KH, KW), jnp.float32) * np.sqrt(2.0 / (C * KH * KW)),
        "bc": jnp.zeros((16,), jnp.float32),
        "w1": jax.random.normal(k1, (128, out_dim), jnp.float32) * np.sqrt(2.0 / out_dim),
        "b1": jnp.zeros((128,), jnp.float32),
        "w2": jax.random.normal(k2, (n_act, 128), jnp.float32) * np.sqrt(2.0 / 128),
        "b2": jnp.zeros((n_act,), jnp.float32),
    }

    x = jax.random.uniform(kx, (B, C, H, W), dtype=jnp.float32)
    ref = actor_forward_ref(x, params)

    # bf16 MXU operands (default, perf path) — looser tolerance vs f32 reference.
    arrays_bf, meta_bf = prepare_actor_params(params, (C, H, W), n_act,
                                              compute_dtype=jnp.bfloat16)
    logits_bf = jax.block_until_ready(actor_forward(x, arrays_bf, meta_bf))
    np.testing.assert_allclose(np.asarray(logits_bf), np.asarray(ref), rtol=2e-2, atol=2e-2)

    # f32 operands — tight numerical check.
    arrays_f32, meta_f32 = prepare_actor_params(params, (C, H, W), n_act,
                                                compute_dtype=jnp.float32)
    logits_f32 = jax.block_until_ready(actor_forward(x, arrays_f32, meta_f32))
    np.testing.assert_allclose(np.asarray(logits_f32), np.asarray(ref), rtol=1e-3, atol=1e-3)

    # RL-scale batch: exercises tile_b=256 and a multi-block (megacore-shardable) grid.
    Bb = 512
    xb = jax.random.uniform(kb, (Bb, C, H, W), dtype=jnp.float32)
    logits_big = jax.block_until_ready(actor_forward(xb, arrays_bf, meta_bf))
    ref_big = actor_forward_ref(xb, params)
    np.testing.assert_allclose(np.asarray(logits_big), np.asarray(ref_big), rtol=2e-2, atol=2e-2)

    # TODO(synk): Actor.get_action (Categorical sampling / log_softmax) is RNG-based
    # policy glue outside forward(); only the forward logits path is implemented here.
    print("KERNEL_OK")
</pallas_src>

<mosaic_0001>
module attributes {stable_mosaic.version = 11 : i64} {
  func.func @_actor_fused_kernel(%arg0: i32, %arg1: memref<10x8x40xbf16, #tpu.memory_space<vmem>>, %arg2: memref<3x40x128xbf16, #tpu.memory_space<vmem>>, %arg3: memref<1x128xf32, #tpu.memory_space<vmem>>, %arg4: memref<1024x128xbf16, #tpu.memory_space<vmem>>, %arg5: memref<1x128xf32, #tpu.memory_space<vmem>>, %arg6: memref<128x128xbf16, #tpu.memory_space<vmem>>, %arg7: memref<1x128xf32, #tpu.memory_space<vmem>>, %arg8: memref<8x128xf32, #tpu.memory_space<vmem>>, %arg9: memref<8x1024xbf16, #tpu.memory_space<vmem>>) attributes {dimension_semantics = [#tpu.dimension_semantics<parallel>], iteration_bounds = array<i64: 1>, scalar_prefetch = 0 : i64, scratch_operands = 1 : i64, tpu.core_type = #tpu.core_type<tc>, window_params = [{transform_indices = @transform_0, window_bounds = array<i64: 10, 8, 40>}, {pipeline_mode = #tpu.pipeline_mode<synchronous>, transform_indices = @transform_1, window_bounds = array<i64: 3, 40, 128>}, {pipeline_mode = #tpu.pipeline_mode<synchronous>, transform_indices = @transform_2, window_bounds = array<i64: 1, 128>}, {pipeline_mode = #tpu.pipeline_mode<synchronous>, transform_indices = @transform_3, window_bounds = array<i64: 1024, 128>}, {pipeline_mode = #tpu.pipeline_mode<synchronous>, transform_indices = @transform_4, window_bounds = array<i64: 1, 128>}, {pipeline_mode = #tpu.pipeline_mode<synchronous>, transform_indices = @transform_5, window_bounds = array<i64: 128, 128>}, {pipeline_mode = #tpu.pipeline_mode<synchronous>, transform_indices = @transform_6, window_bounds = array<i64: 1, 128>}, {transform_indices = @transform_7, window_bounds = array<i64: 8, 128>}]} {
    %c0 = arith.constant 0 : index
    %c0_0 = arith.constant 0 : index
    %0 = vector.load %arg3[%c0, %c0_0] : memref<1x128xf32, #tpu.memory_space<vmem>>, vector<1x128xf32>
    %1 = vector.shape_cast %0 : vector<1x128xf32> to vector<1x128xf32>
    %2 = vector.broadcast %1 : vector<1x128xf32> to vector<8x128xf32>
    %cst = arith.constant 0.000000e+00 : f32
    %3 = vector.broadcast %cst : f32 to vector<8x128xf32>
    %c0_1 = arith.constant 0 : index
    %c0_2 = arith.constant 0 : index
    %c0_3 = arith.constant 0 : index
    %4 = vector.load %arg1[%c0_1, %c0_2, %c0_3] : memref<10x8x40xbf16, #tpu.memory_space<vmem>>, vector<1x8x40xbf16>
    %5 = vector.shape_cast %4 : vector<1x8x40xbf16> to vector<8x40xbf16>
    %c0_4 = arith.constant 0 : index
    %c0_5 = arith.constant 0 : index
    %c0_6 = arith.constant 0 : index
    %6 = vector.load %arg2[%c0_4, %c0_5, %c0_6] : memref<3x40x128xbf16, #tpu.memory_space<vmem>>, vector<1x40x128xbf16>
    %7 = vector.shape_cast %6 : vector<1x40x128xbf16> to vector<40x128xbf16>
    %cst_7 = arith.constant dense<0.000000e+00> : vector<8x128xf32>
    %8 = tpu.matmul %5, %7, %cst_7 {dimension_numbers = #tpu.dot_dimension_numbers<[1], [0], [0], [1], [0, 0, 1, 1], [], []>} : vector<8x40xbf16>, vector<40x128xbf16>, vector<8x128xf32> -> vector<8x128xf32>
    %9 = arith.addf %3, %8 : vector<8x128xf32>
    %c1 = arith.constant 1 : index
    %c0_8 = arith.constant 0 : index
    %c0_9 = arith.constant 0 : index
    %10 = vector.load %arg1[%c1, %c0_8, %c0_9] : memref<10x8x40xbf16, #tpu.memory_space<vmem>>, vector<1x8x40xbf16>
    %11 = vector.shape_cast %10 : vector<1x8x40xbf16> to vector<8x40xbf16>
    %c1_10 = arith.constant 1 : index
    %c0_11 = arith.constant 0 : index
    %c0_12 = arith.constant 0 : index
    %12 = vector.load %arg2[%c1_10, %c0_11, %c0_12] : memref<3x40x128xbf16, #tpu.memory_space<vmem>>, vector<1x40x128xbf16>
    %13 = vector.shape_cast %12 : vector<1x40x128xbf16> to vector<40x128xbf16>
    %cst_13 = arith.constant dense<0.000000e+00> : vector<8x128xf32>
    %14 = tpu.matmul %11, %13, %cst_13 {dimension_numbers = #tpu.dot_dimension_numbers<[1], [0], [0], [1], [0, 0, 1, 1], [], []>} : vector<8x40xbf16>, vector<40x128xbf16>, vector<8x128xf32> -> vector<8x128xf32>
    %15 = arith.addf %9, %14 : vector<8x128xf32>
    %c2 = arith.constant 2 : index
    %c0_14 = arith.constant 0 : index
    %c0_15 = arith.constant 0 : index
    %16 = vector.load %arg1[%c2, %c0_14, %c0_15] : memref<10x8x40xbf16, #tpu.memory_space<vmem>>, vector<1x8x40xbf16>
    %17 = vector.shape_cast %16 : vector<1x8x40xbf16> to vector<8x40xbf16>
    %c2_16 = arith.constant 2 : index
    %c0_17 = arith.constant 0 : index
    %c0_18 = arith.constant 0 : index
    %18 = vector.load %arg2[%c2_16, %c0_17, %c0_18] : memref<3x40x128xbf16, #tpu.memory_space<vmem>>, vector<1x40x128xbf16>
    %19 = vector.shape_cast %18 : vector<1x40x128xbf16> to vector<40x128xbf16>
    %cst_19 = arith.constant dense<0.000000e+00> : vector<8x128xf32>
    %20 = tpu.matmul %17, %19, %cst_19 {dimension_numbers = #tpu.dot_dimension_numbers<[1], [0], [0], [1], [0, 0, 1, 1], [], []>} : vector<8x40xbf16>, vector<40x128xbf16>, vector<8x128xf32> -> vector<8x128xf32>
    %21 = arith.addf %15, %20 : vector<8x128xf32>
    %22 = arith.addf %21, %2 : vector<8x128xf32>
    %cst_20 = arith.constant 0.000000e+00 : f32
    %23 = vector.broadcast %cst_20 : f32 to vector<8x128xf32>
    %24 = arith.maximumf %22, %23 : vector<8x128xf32>
    %25 = arith.truncf %24 : vector<8x128xf32> to vector<8x128xbf16>
    %c0_21 = arith.constant 0 : index
    %c0_22 = arith.constant 0 : index
    %26 = vector.load %arg9[%c0_21, %c0_22] : memref<8x1024xbf16, #tpu.memory_space<vmem>>, vector<8x128xbf16>
    tpu.vector_store %arg9[%c0_21, %c0_22], %25 {strides = array<i32>} : memref<8x1024xbf16, #tpu.memory_space<vmem>>, vector<8x128xbf16>,
    %cst_23 = arith.constant 0.000000e+00 : f32
    %27 = vector.broadcast %cst_23 : f32 to vector<8x128xf32>
    %c1_24 = arith.constant 1 : index
    %c0_25 = arith.constant 0 : index
    %c0_26 = arith.constant 0 : index
    %28 = vector.load %arg1[%c1_24, %c0_25, %c0_26] : memref<10x8x40xbf16, #tpu.memory_space<vmem>>, vector<1x8x40xbf16>
    %29 = vector.shape_cast %28 : vector<1x8x40xbf16> to vector<8x40xbf16>
    %c0_27 = arith.constant 0 : index
    %c0_28 = arith.constant 0 : index
    %c0_29 = arith.constant 0 : index
    %30 = vector.load %arg2[%c0_27, %c0_28, %c0_29] : memref<3x40x128xbf16, #tpu.memory_space<vmem>>, vector<1x40x128xbf16>
    %31 = vector.shape_cast %30 : vector<1x40x128xbf16> to vector<40x128xbf16>
    %cst_30 = arith.constant dense<0.000000e+00> : vector<8x128xf32>
    %32 = tpu.matmul %29, %31, %cst_30 {dimension_numbers = #tpu.dot_dimension_numbers<[1], [0], [0], [1], [0, 0, 1, 1], [], []>} : vector<8x40xbf16>, vector<40x128xbf16>, vector<8x128xf32> -> vector<8x128xf32>
    %33 = arith.addf %27, %32 : vector<8x128xf32>
    %c2_31 = arith.constant 2 : index
    %c0_32 = arith.constant 0 : index
    %c0_33 = arith.constant 0 : index
    %34 = vector.load %arg1[%c2_31, %c0_32, %c0_33] : memref<10x8x40xbf16, #tpu.memory_space<vmem>>, vector<1x8x40xbf16>
    %35 = vector.shape_cast %34 : vector<1x8x40xbf16> to vector<8x40xbf16>
    %c1_34 = arith.constant 1 : index
    %c0_35 = arith.constant 0 : index
    %c0_36 = arith.constant 0 : index
    %36 = vector.load %arg2[%c1_34, %c0_35, %c0_36] : memref<3x40x128xbf16, #tpu.memory_space<vmem>>, vector<1x40x128xbf16>
    %37 = vector.shape_cast %36 : vector<1x40x128xbf16> to vector<40x128xbf16>
    %cst_37 = arith.constant dense<0.000000e+00> : vector<8x128xf32>
    %38 = tpu.matmul %35, %37, %cst_37 {dimension_numbers = #tpu.dot_dimension_numbers<[1], [0], [0], [1], [0, 0, 1, 1], [], []>} : vector<8x40xbf16>, vector<40x128xbf16>, vector<8x128xf32> -> vector<8x128xf32>
    %39 = arith.addf %33, %38 : vector<8x128xf32>
    %c3 = arith.constant 3 : index
    %c0_38 = arith.constant 0 : index
    %c0_39 = arith.constant 0 : index
    %40 = vector.load %arg1[%c3, %c0_38, %c0_39] : memref<10x8x40xbf16, #tpu.memory_space<vmem>>, vector<1x8x40xbf16>
    %41 = vector.shape_cast %40 : vector<1x8x40xbf16> to vector<8x40xbf16>
    %c2_40 = arith.constant 2 : index
    %c0_41 = arith.constant 0 : index
    %c0_42 = arith.constant 0 : index
    %42 = vector.load %arg2[%c2_40, %c0_41, %c0_42] : memref<3x40x128xbf16, #tpu.memory_space<vmem>>, vector<1x40x128xbf16>
    %43 = vector.shape_cast %42 : vector<1x40x128xbf16> to vector<40x128xbf16>
    %cst_43 = arith.constant dense<0.000000e+00> : vector<8x128xf32>
    %44 = tpu.matmul %41, %43, %cst_43 {dimension_numbers = #tpu.dot_dimension_numbers<[1], [0], [0], [1], [0, 0, 1, 1], [], []>} : vector<8x40xbf16>, vector<40x128xbf16>, vector<8x128xf32> -> vector<8x128xf32>
    %45 = arith.addf %39, %44 : vector<8x128xf32>
    %46 = arith.addf %45, %2 : vector<8x128xf32>
    %cst_44 = arith.constant 0.000000e+00 : f32
    %47 = vector.broadcast %cst_44 : f32 to vector<8x128xf32>
    %48 = arith.maximumf %46, %47 : vector<8x128xf32>
    %49 = arith.truncf %48 : vector<8x128xf32> to vector<8x128xbf16>
    %c0_45 = arith.constant 0 : index
    %c128 = arith.constant 128 : index
    %50 = vector.load %arg9[%c0_45, %c128] : memref<8x1024xbf16, #tpu.memory_space<vmem>>, vector<8x128xbf16>
    tpu.vector_store %arg9[%c0_45, %c128], %49 {strides = array<i32>} : memref<8x1024xbf16, #tpu.memory_space<vmem>>, vector<8x128xbf16>,
    %cst_46 = arith.constant 0.000000e+00 : f32
    %51 = vector.broadcast %cst_46 : f32 to vector<8x128xf32>
    %c2_47 = arith.constant 2 : index
    %c0_48 = arith.constant 0 : index
    %c0_49 = arith.constant 0 : index
    %52 = vector.load %arg1[%c2_47, %c0_48, %c0_49] : memref<10x8x40xbf16, #tpu.memory_space<vmem>>, vector<1x8x40xbf16>
    %53 = vector.shape_cast %52 : vector<1x8x40xbf16> to vector<8x40xbf16>
    %c0_50 = arith.constant 0 : index
    %c0_51 = arith.constant 0 : index
    %c0_52 = arith.constant 0 : index
    %54 = vector.load %arg2[%c0_50, %c0_51, %c0_52] : memref<3x40x128xbf16, #tpu.memory_space<vmem>>, vector<1x40x128xbf16>
    %55 = vector.shape_cast %54 : vector<1x40x128xbf16> to vector<40x128xbf16>
    %cst_53 = arith.constant dense<0.000000e+00> : vector<8x128xf32>
    %56 = tpu.matmul %53, %55, %cst_53 {dimension_numbers = #tpu.dot_dimension_numbers<[1], [0], [0], [1], [0, 0, 1, 1], [], []>} : vector<8x40xbf16>, vector<40x128xbf16>, vector<8x128xf32> -> vector<8x128xf32>
    %57 = arith.addf %51, %56 : vector<8x128xf32>
    %c3_54 = arith.constant 3 : index
    %c0_55 = arith.constant 0 : index
    %c0_56 = arith.constant 0 : index
    %58 = vector.load %arg1[%c3_54, %c0_55, %c0_56] : memref<10x8x40xbf16, #tpu.memory_space<vmem>>, vector<1x8x40xbf16>
    %59 = vector.shape_cast %58 : vector<1x8x40xbf16> to vector<8x40xbf16>
    %c1_57 = arith.constant 1 : index
    %c0_58 = arith.constant 0 : index
    %c0_59 = arith.constant 0 : index
    %60 = vector.load %arg2[%c1_57, %c0_58, %c0_59] : memref<3x40x128xbf16, #tpu.memory_space<vmem>>, vector<1x40x128xbf16>
    %61 = vector.shape_cast %60 : vector<1x40x128xbf16> to vector<40x128xbf16>
    %cst_60 = arith.constant dense<0.000000e+00> : vector<8x128xf32>
    %62 = tpu.matmul %59, %61, %cst_60 {dimension_numbers = #tpu.dot_dimension_numbers<[1], [0], [0], [1], [0, 0, 1, 1], [], []>} : vector<8x40xbf16>, vector<40x128xbf16>, vector<8x128xf32> -> vector<8x128xf32>
    %63 = arith.addf %57, %62 : vector<8x128xf32>
    %c4 = arith.constant 4 : index
    %c0_61 = arith.constant 0 : index
    %c0_62 = arith.constant 0 : index
    %64 = vector.load %arg1[%c4, %c0_61, %c0_62] : memref<10x8x40xbf16, #tpu.memory_space<vmem>>, vector<1x8x40xbf16>
    %65 = vector.shape_cast %64 : vector<1x8x40xbf16> to vector<8x40xbf16>
    %c2_63 = arith.constant 2 : index
    %c0_64 = arith.constant 0 : index
    %c0_65 = arith.constant 0 : index
    %66 = vector.load %arg2[%c2_63, %c0_64, %c0_65] : memref<3x40x128xbf16, #tpu.memory_space<vmem>>, vector<1x40x128xbf16>
    %67 = vector.shape_cast %66 : vector<1x40x128xbf16> to vector<40x128xbf16>
    %cst_66 = arith.constant dense<0.000000e+00> : vector<8x128xf32>
    %68 = tpu.matmul %65, %67, %cst_66 {dimension_numbers = #tpu.dot_dimension_numbers<[1], [0], [0], [1], [0, 0, 1, 1], [], []>} : vector<8x40xbf16>, vector<40x128xbf16>, vector<8x128xf32> -> vector<8x128xf32>
    %69 = arith.addf %63, %68 : vector<8x128xf32>
    %70 = arith.addf %69, %2 : vector<8x128xf32>
    %cst_67 = arith.constant 0.000000e+00 : f32
    %71 = vector.broadcast %cst_67 : f32 to vector<8x128xf32>
    %72 = arith.maximumf %70, %71 : vector<8x128xf32>
    %73 = arith.truncf %72 : vector<8x128xf32> to vector<8x128xbf16>
    %c0_68 = arith.constant 0 : index
    %c256 = arith.constant 256 : index
    %74 = vector.load %arg9[%c0_68, %c256] : memref<8x1024xbf16, #tpu.memory_space<vmem>>, vector<8x128xbf16>
    tpu.vector_store %arg9[%c0_68, %c256], %73 {strides = array<i32>} : memref<8x1024xbf16, #tpu.memory_space<vmem>>, vector<8x128xbf16>,
    %cst_69 = arith.constant 0.000000e+00 : f32
    %75 = vector.broadcast %cst_69 : f32 to vector<8x128xf32>
    %c3_70 = arith.constant 3 : index
    %c0_71 = arith.constant 0 : index
    %c0_72 = arith.constant 0 : index
    %76 = vector.load %arg1[%c3_70, %c0_71, %c0_72] : memref<10x8x40xbf16, #tpu.memory_space<vmem>>, vector<1x8x40xbf16>
    %77 = vector.shape_cast %76 : vector<1x8x40xbf16> to vector<8x40xbf16>
    %c0_73 = arith.constant 0 : index
    %c0_74 = arith.constant 0 : index
    %c0_75 = arith.constant 0 : index
    %78 = vector.load %arg2[%c0_73, %c0_74, %c0_75] : memref<3x40x128xbf16, #tpu.memory_space<vmem>>, vector<1x40x128xbf16>
    %79 = vector.shape_cast %78 : vector<1x40x128xbf16> to vector<40x128xbf16>
    %cst_76 = arith.constant dense<0.000000e+00> : vector<8x128xf32>
    %80 = tpu.matmul %77, %79, %cst_76 {dimension_numbers = #tpu.dot_dimension_numbers<[1], [0], [0], [1], [0, 0, 1, 1], [], []>} : vector<8x40xbf16>, vector<40x128xbf16>, vector<8x128xf32> -> vector<8x128xf32>
    %81 = arith.addf %75, %80 : vector<8x128xf32>
    %c4_77 = arith.constant 4 : index
    %c0_78 = arith.constant 0 : index
    %c0_79 = arith.constant 0 : index
    %82 = vector.load %arg1[%c4_77, %c0_78, %c0_79] : memref<10x8x40xbf16, #tpu.memory_space<vmem>>, vector<1x8x40xbf16>
    %83 = vector.shape_cast %82 : vector<1x8x40xbf16> to vector<8x40xbf16>
    %c1_80 = arith.constant 1 : index
    %c0_81 = arith.constant 0 : index
    %c0_82 = arith.constant 0 : index
    %84 = vector.load %arg2[%c1_80, %c0_81, %c0_82] : memref<3x40x128xbf16, #tpu.memory_space<vmem>>, vector<1x40x128xbf16>
    %85 = vector.shape_cast %84 : vector<1x40x128xbf16> to vector<40x128xbf16>
    %cst_83 = arith.constant dense<0.000000e+00> : vector<8x128xf32>
    %86 = tpu.matmul %83, %85, %cst_83 {dimension_numbers = #tpu.dot_dimension_numbers<[1], [0], [0], [1], [0, 0, 1, 1], [], []>} : vector<8x40xbf16>, vector<40x128xbf16>, vector<8x128xf32> -> vector<8x128xf32>
    %87 = arith.addf %81, %86 : vector<8x128xf32>
    %c5 = arith.constant 5 : index
    %c0_84 = arith.constant 0 : index
    %c0_85 = arith.constant 0 : index
    %88 = vector.load %arg1[%c5, %c0_84, %c0_85] : memref<10x8x40xbf16, #tpu.memory_space<vmem>>, vector<1x8x40xbf16>
    %89 = vector.shape_cast %88 : vector<1x8x40xbf16> to vector<8x40xbf16>
    %c2_86 = arith.constant 2 : index
    %c0_87 = arith.constant 0 : index
    %c0_88 = arith.constant 0 : index
    %90 = vector.load %arg2[%c2_86, %c0_87, %c0_88] : memref<3x40x128xbf16, #tpu.memory_space<vmem>>, vector<1x40x128xbf16>
    %91 = vector.shape_cast %90 : vector<1x40x128xbf16> to vector<40x128xbf16>
    %cst_89 = arith.constant dense<0.000000e+00> : vector<8x128xf32>
    %92 = tpu.matmul %89, %91, %cst_89 {dimension_numbers = #tpu.dot_dimension_numbers<[1], [0], [0], [1], [0, 0, 1, 1], [], []>} : vector<8x40xbf16>, vector<40x128xbf16>, vector<8x128xf32> -> vector<8x128xf32>
    %93 = arith.addf %87, %92 : vector<8x128xf32>
    %94 = arith.addf %93, %2 : vector<8x128xf32>
    %cst_90 = arith.constant 0.000000e+00 : f32
    %95 = vector.broadcast %cst_90 : f32 to vector<8x128xf32>
    %96 = arith.maximumf %94, %95 : vector<8x128xf32>
    %97 = arith.truncf %96 : vector<8x128xf32> to vector<8x128xbf16>
    %c0_91 = arith.constant 0 : index
    %c384 = arith.constant 384 : index
    %98 = vector.load %arg9[%c0_91, %c384] : memref<8x1024xbf16, #tpu.memory_space<vmem>>, vector<8x128xbf16>
    tpu.vector_store %arg9[%c0_91, %c384], %97 {strides = array<i32>} : memref<8x1024xbf16, #tpu.memory_space<vmem>>, vector<8x128xbf16>,
    %cst_92 = arith.constant 0.000000e+00 : f32
    %99 = vector.broadcast %cst_92 : f32 to vector<8x128xf32>
    %c4_93 = arith.constant 4 : index
    %c0_94 = arith.constant 0 : index
    %c0_95 = arith.constant 0 : index
    %100 = vector.load %arg1[%c4_93, %c0_94, %c0_95] : memref<10x8x40xbf16, #tpu.memory_space<vmem>>, vector<1x8x40xbf16>
    %101 = vector.shape_cast %100 : vector<1x8x40xbf16> to vector<8x40xbf16>
    %c0_96 = arith.constant 0 : index
    %c0_97 = arith.constant 0 : index
    %c0_98 = arith.constant 0 : index
    %102 = vector.load %arg2[%c0_96, %c0_97, %c0_98] : memref<3x40x128xbf16, #tpu.memory_space<vmem>>, vector<1x40x128xbf16>
    %103 = vector.shape_cast %102 : vector<1x40x128xbf16> to vector<40x128xbf16>
    %cst_99 = arith.constant dense<0.000000e+00> : vector<8x128xf32>
    %104 = tpu.matmul %101, %103, %cst_99 {dimension_numbers = #tpu.dot_dimension_numbers<[1], [0], [0], [1], [0, 0, 1, 1], [], []>} : vector<8x40xbf16>, vector<40x128xbf16>, vector<8x128xf32> -> vector<8x128xf32>
    %105 = arith.addf %99, %104 : vector<8x128xf32>
    %c5_100 = arith.constant 5 : index
    %c0_101 = arith.constant 0 : index
    %c0_102 = arith.constant 0 : index
    %106 = vector.load %arg1[%c5_100, %c0_101, %c0_102] : memref<10x8x40xbf16, #tpu.memory_space<vmem>>, vector<1x8x40xbf16>
    %107 = vector.shape_cast %106 : vector<1x8x40xbf16> to vector<8x40xbf16>
    %c1_103 = arith.constant 1 : index
    %c0_104 = arith.constant 0 : index
    %c0_105 = arith.constant 0 : index
    %108 = vector.load %arg2[%c1_103, %c0_104, %c0_105] : memref<3x40x128xbf16, #tpu.memory_space<vmem>>, vector<1x40x128xbf16>
    %109 = vector.shape_cast %108 : vector<1x40x128xbf16> to vector<40x128xbf16>
    %cst_106 = arith.constant dense<0.000000e+00> : vector<8x128xf32>
    %110 = tpu.matmul %107, %109, %cst_106 {dimension_numbers = #tpu.dot_dimension_numbers<[1], [0], [0], [1], [0, 0, 1, 1], [], []>} : vector<8x40xbf16>, vector<40x128xbf16>, vector<8x128xf32> -> vector<8x128xf32>
    %111 = arith.addf %105, %110 : vector<8x128xf32>
    %c6 = arith.constant 6 : index
    %c0_107 = arith.constant 0 : index
    %c0_108 = arith.constant 0 : index
    %112 = vector.load %arg1[%c6, %c0_107, %c0_108] : memref<10x8x40xbf16, #tpu.memory_space<vmem>>, vector<1x8x40xbf16>
    %113 = vector.shape_cast %112 : vector<1x8x40xbf16> to vector<8x40xbf16>
    %c2_109 = arith.constant 2 : index
    %c0_110 = arith.constant 0 : index
    %c0_111 = arith.constant 0 : index
    %114 = vector.load %arg2[%c2_109, %c0_110, %c0_111] : memref<3x40x128xbf16, #tpu.memory_space<vmem>>, vector<1x40x128xbf16>
    %115 = vector.shape_cast %114 : vector<1x40x128xbf16> to vector<40x128xbf16>
    %cst_112 = arith.constant dense<0.000000e+00> : vector<8x128xf32>
    %116 = tpu.matmul %113, %115, %cst_112 {dimension_numbers = #tpu.dot_dimension_numbers<[1], [0], [0], [1], [0, 0, 1, 1], [], []>} : vector<8x40xbf16>, vector<40x128xbf16>, vector<8x128xf32> -> vector<8x128xf32>
    %117 = arith.addf %111, %116 : vector<8x128xf32>
    %118 = arith.addf %117, %2 : vector<8x128xf32>
    %cst_113 = arith.constant 0.000000e+00 : f32
    %119 = vector.broadcast %cst_113 : f32 to vector<8x128xf32>
    %120 = arith.maximumf %118, %119 : vector<8x128xf32>
    %121 = arith.truncf %120 : vector<8x128xf32> to vector<8x128xbf16>
    %c0_114 = arith.constant 0 : index
    %c512 = arith.constant 512 : index
    %122 = vector.load %arg9[%c0_114, %c512] : memref<8x1024xbf16, #tpu.memory_space<vmem>>, vector<8x128xbf16>
    tpu.vector_store %arg9[%c0_114, %c512], %121 {strides = array<i32>} : memref<8x1024xbf16, #tpu.memory_space<vmem>>, vector<8x128xbf16>,
    %cst_115 = arith.constant 0.000000e+00 : f32
    %123 = vector.broadcast %cst_115 : f32 to vector<8x128xf32>
    %c5_116 = arith.constant 5 : index
    %c0_117 = arith.constant 0 : index
    %c0_118 = arith.constant 0 : index
    %124 = vector.load %arg1[%c5_116, %c0_117, %c0_118] : memref<10x8x40xbf16, #tpu.memory_space<vmem>>, vector<1x8x40xbf16>
    %125 = vector.shape_cast %124 : vector<1x8x40xbf16> to vector<8x40xbf16>
    %c0_119 = arith.constant 0 : index
    %c0_120 = arith.constant 0 : index
    %c0_121 = arith.constant 0 : index
    %126 = vector.load %arg2[%c0_119, %c0_120, %c0_121] : memref<3x40x128xbf16, #tpu.memory_space<vmem>>, vector<1x40x128xbf16>
    %127 = vector.shape_cast %126 : vector<1x40x128xbf16> to vector<40x128xbf16>
    %cst_122 = arith.constant dense<0.000000e+00> : vector<8x128xf32>
    %128 = tpu.matmul %125, %127, %cst_122 {dimension_numbers = #tpu.dot_dimension_numbers<[1], [0], [0], [1], [0, 0, 1, 1], [], []>} : vector<8x40xbf16>, vector<40x128xbf16>, vector<8x128xf32> -> vector<8x128xf32>
    %129 = arith.addf %123, %128 : vector<8x128xf32>
    %c6_123 = arith.constant 6 : index
    %c0_124 = arith.constant 0 : index
    %c0_125 = arith.constant 0 : index
    %130 = vector.load %arg1[%c6_123, %c0_124, %c0_125] : memref<10x8x40xbf16, #tpu.memory_space<vmem>>, vector<1x8x40xbf16>
    %131 = vector.shape_cast %130 : vector<1x8x40xbf16> to vector<8x40xbf16>
    %c1_126 = arith.constant 1 : index
    %c0_127 = arith.constant 0 : index
    %c0_128 = arith.constant 0 : index
    %132 = vector.load %arg2[%c1_126, %c0_127, %c0_128] : memref<3x40x128xbf16, #tpu.memory_space<vmem>>, vector<1x40x128xbf16>
    %133 = vector.shape_cast %132 : vector<1x40x128xbf16> to vector<40x128xbf16>
    %cst_129 = arith.constant dense<0.000000e+00> : vector<8x128xf32>
    %134 = tpu.matmul %131, %133, %cst_129 {dimension_numbers = #tpu.dot_dimension_numbers<[1], [0], [0], [1], [0, 0, 1, 1], [], []>} : vector<8x40xbf16>, vector<40x128xbf16>, vector<8x128xf32> -> vector<8x128xf32>
    %135 = arith.addf %129, %134 : vector<8x128xf32>
    %c7 = arith.constant 7 : index
    %c0_130 = arith.constant 0 : index
    %c0_131 = arith.constant 0 : index
    %136 = vector.load %arg1[%c7, %c0_130, %c0_131] : memref<10x8x40xbf16, #tpu.memory_space<vmem>>, vector<1x8x40xbf16>
    %137 = vector.shape_cast %136 : vector<1x8x40xbf16> to vector<8x40xbf16>
    %c2_132 = arith.constant 2 : index
    %c0_133 = arith.constant 0 : index
    %c0_134 = arith.constant 0 : index
    %138 = vector.load %arg2[%c2_132, %c0_133, %c0_134] : memref<3x40x128xbf16, #tpu.memory_space<vmem>>, vector<1x40x128xbf16>
    %139 = vector.shape_cast %138 : vector<1x40x128xbf16> to vector<40x128xbf16>
    %cst_135 = arith.constant dense<0.000000e+00> : vector<8x128xf32>
    %140 = tpu.matmul %137, %139, %cst_135 {dimension_numbers = #tpu.dot_dimension_numbers<[1], [0], [0], [1], [0, 0, 1, 1], [], []>} : vector<8x40xbf16>, vector<40x128xbf16>, vector<8x128xf32> -> vector<8x128xf32>
    %141 = arith.addf %135, %140 : vector<8x128xf32>
    %142 = arith.addf %141, %2 : vector<8x128xf32>
    %cst_136 = arith.constant 0.000000e+00 : f32
    %143 = vector.broadcast %cst_136 : f32 to vector<8x128xf32>
    %144 = arith.maximumf %142, %143 : vector<8x128xf32>
    %145 = arith.truncf %144 : vector<8x128xf32> to vector<8x128xbf16>
    %c0_137 = arith.constant 0 : index
    %c640 = arith.constant 640 : index
    %146 = vector.load %arg9[%c0_137, %c640] : memref<8x1024xbf16, #tpu.memory_space<vmem>>, vector<8x128xbf16>
    tpu.vector_store %arg9[%c0_137, %c640], %145 {strides = array<i32>} : memref<8x1024xbf16, #tpu.memory_space<vmem>>, vector<8x128xbf16>,
    %cst_138 = arith.constant 0.000000e+00 : f32
    %147 = vector.broadcast %cst_138 : f32 to vector<8x128xf32>
    %c6_139 = arith.constant 6 : index
    %c0_140 = arith.constant 0 : index
    %c0_141 = arith.constant 0 : index
    %148 = vector.load %arg1[%c6_139, %c0_140, %c0_141] : memref<10x8x40xbf16, #tpu.memory_space<vmem>>, vector<1x8x40xbf16>
    %149 = vector.shape_cast %148 : vector<1x8x40xbf16> to vector<8x40xbf16>
    %c0_142 = arith.constant 0 : index
    %c0_143 = arith.constant 0 : index
    %c0_144 = arith.constant 0 : index
    %150 = vector.load %arg2[%c0_142, %c0_143, %c0_144] : memref<3x40x128xbf16, #tpu.memory_space<vmem>>, vector<1x40x128xbf16>
    %151 = vector.shape_cast %150 : vector<1x40x128xbf16> to vector<40x128xbf16>
    %cst_145 = arith.constant dense<0.000000e+00> : vector<8x128xf32>
    %152 = tpu.matmul %149, %151, %cst_145 {dimension_numbers = #tpu.dot_dimension_numbers<[1], [0], [0], [1], [0, 0, 1, 1], [], []>} : vector<8x40xbf16>, vector<40x128xbf16>, vector<8x128xf32> -> vector<8x128xf32>
    %153 = arith.addf %147, %152 : vector<8x128xf32>
    %c7_146 = arith.constant 7 : index
    %c0_147 = arith.constant 0 : index
    %c0_148 = arith.constant 0 : index
    %154 = vector.load %arg1[%c7_146, %c0_147, %c0_148] : memref<10x8x40xbf16, #tpu.memory_space<vmem>>, vector<1x8x40xbf16>
    %155 = vector.shape_cast %154 : vector<1x8x40xbf16> to vector<8x40xbf16>
    %c1_149 = arith.constant 1 : index
    %c0_150 = arith.constant 0 : index
    %c0_151 = arith.constant 0 : index
    %156 = vector.load %arg2[%c1_149, %c0_150, %c0_151] : memref<3x40x128xbf16, #tpu.memory_space<vmem>>, vector<1x40x128xbf16>
    %157 = vector.shape_cast %156 : vector<1x40x128xbf16> to vector<40x128xbf16>
    %cst_152 = arith.constant dense<0.000000e+00> : vector<8x128xf32>
    %158 = tpu.matmul %155, %157, %cst_152 {dimension_numbers = #tpu.dot_dimension_numbers<[1], [0], [0], [1], [0, 0, 1, 1], [], []>} : vector<8x40xbf16>, vector<40x128xbf16>, vector<8x128xf32> -> vector<8x128xf32>
    %159 = arith.addf %153, %158 : vector<8x128xf32>
    %c8 = arith.constant 8 : index
    %c0_153 = arith.constant 0 : index
    %c0_154 = arith.constant 0 : index
    %160 = vector.load %arg1[%c8, %c0_153, %c0_154] : memref<10x8x40xbf16, #tpu.memory_space<vmem>>, vector<1x8x40xbf16>
    %161 = vector.shape_cast %160 : vector<1x8x40xbf16> to vector<8x40xbf16>
    %c2_155 = arith.constant 2 : index
    %c0_156 = arith.constant 0 : index
    %c0_157 = arith.constant 0 : index
    %162 = vector.load %arg2[%c2_155, %c0_156, %c0_157] : memref<3x40x128xbf16, #tpu.memory_space<vmem>>, vector<1x40x128xbf16>
    %163 = vector.shape_cast %162 : vector<1x40x128xbf16> to vector<40x128xbf16>
    %cst_158 = arith.constant dense<0.000000e+00> : vector<8x128xf32>
    %164 = tpu.matmul %161, %163, %cst_158 {dimension_numbers = #tpu.dot_dimension_numbers<[1], [0], [0], [1], [0, 0, 1, 1], [], []>} : vector<8x40xbf16>, vector<40x128xbf16>, vector<8x128xf32> -> vector<8x128xf32>
    %165 = arith.addf %159, %164 : vector<8x128xf32>
    %166 = arith.addf %165, %2 : vector<8x128xf32>
    %cst_159 = arith.constant 0.000000e+00 : f32
    %167 = vector.broadcast %cst_159 : f32 to vector<8x128xf32>
    %168 = arith.maximumf %166, %167 : vector<8x128xf32>
    %169 = arith.truncf %168 : vector<8x128xf32> to vector<8x128xbf16>
    %c0_160 = arith.constant 0 : index
    %c768 = arith.constant 768 : index
    %170 = vector.load %arg9[%c0_160, %c768] : memref<8x1024xbf16, #tpu.memory_space<vmem>>, vector<8x128xbf16>
    tpu.vector_store %arg9[%c0_160, %c768], %169 {strides = array<i32>} : memref<8x1024xbf16, #tpu.memory_space<vmem>>, vector<8x128xbf16>,
    %cst_161 = arith.constant 0.000000e+00 : f32
    %171 = vector.broadcast %cst_161 : f32 to vector<8x128xf32>
    %c7_162 = arith.constant 7 : index
    %c0_163 = arith.constant 0 : index
    %c0_164 = arith.constant 0 : index
    %172 = vector.load %arg1[%c7_162, %c0_163, %c0_164] : memref<10x8x40xbf16, #tpu.memory_space<vmem>>, vector<1x8x40xbf16>
    %173 = vector.shape_cast %172 : vector<1x8x40xbf16> to vector<8x40xbf16>
    %c0_165 = arith.constant 0 : index
    %c0_166 = arith.constant 0 : index
    %c0_167 = arith.constant 0 : index
    %174 = vector.load %arg2[%c0_165, %c0_166, %c0_167] : memref<3x40x128xbf16, #tpu.memory_space<vmem>>, vector<1x40x128xbf16>
    %175 = vector.shape_cast %174 : vector<1x40x128xbf16> to vector<40x128xbf16>
    %cst_168 = arith.constant dense<0.000000e+00> : vector<8x128xf32>
    %176 = tpu.matmul %173, %175, %cst_168 {dimension_numbers = #tpu.dot_dimension_numbers<[1], [0], [0], [1], [0, 0, 1, 1], [], []>} : vector<8x40xbf16>, vector<40x128xbf16>, vector<8x128xf32> -> vector<8x128xf32>
    %177 = arith.addf %171, %176 : vector<8x128xf32>
    %c8_169 = arith.constant 8 : index
    %c0_170 = arith.constant 0 : index
    %c0_171 = arith.constant 0 : index
    %178 = vector.load %arg1[%c8_169, %c0_170, %c0_171] : memref<10x8x40xbf16, #tpu.memory_space<vmem>>, vector<1x8x40xbf16>
    %179 = vector.shape_cast %178 : vector<1x8x40xbf16> to vector<8x40xbf16>
    %c1_172 = arith.constant 1 : index
    %c0_173 = arith.constant 0 : index
    %c0_174 = arith.constant 0 : index
    %180 = vector.load %arg2[%c1_172, %c0_173, %c0_174] : memref<3x40x128xbf16, #tpu.memory_space<vmem>>, vector<1x40x128xbf16>
    %181 = vector.shape_cast %180 : vector<1x40x128xbf16> to vector<40x128xbf16>
    %cst_175 = arith.constant dense<0.000000e+00> : vector<8x128xf32>
    %182 = tpu.matmul %179, %181, %cst_175 {dimension_numbers = #tpu.dot_dimension_numbers<[1], [0], [0], [1], [0, 0, 1, 1], [], []>} : vector<8x40xbf16>, vector<40x128xbf16>, vector<8x128xf32> -> vector<8x128xf32>
    %183 = arith.addf %177, %182 : vector<8x128xf32>
    %c9 = arith.constant 9 : index
    %c0_176 = arith.constant 0 : index
    %c0_177 = arith.constant 0 : index
    %184 = vector.load %arg1[%c9, %c0_176, %c0_177] : memref<10x8x40xbf16, #tpu.memory_space<vmem>>, vector<1x8x40xbf16>
    %185 = vector.shape_cast %184 : vector<1x8x40xbf16> to vector<8x40xbf16>
    %c2_178 = arith.constant 2 : index
    %c0_179 = arith.constant 0 : index
    %c0_180 = arith.constant 0 : index
    %186 = vector.load %arg2[%c2_178, %c0_179, %c0_180] : memref<3x40x128xbf16, #tpu.memory_space<vmem>>, vector<1x40x128xbf16>
    %187 = vector.shape_cast %186 : vector<1x40x128xbf16> to vector<40x128xbf16>
    %cst_181 = arith.constant dense<0.000000e+00> : vector<8x128xf32>
    %188 = tpu.matmul %185, %187, %cst_181 {dimension_numbers = #tpu.dot_dimension_numbers<[1], [0], [0], [1], [0, 0, 1, 1], [], []>} : vector<8x40xbf16>, vector<40x128xbf16>, vector<8x128xf32> -> vector<8x128xf32>
    %189 = arith.addf %183, %188 : vector<8x128xf32>
    %190 = arith.addf %189, %2 : vector<8x128xf32>
    %cst_182 = arith.constant 0.000000e+00 : f32
    %191 = vector.broadcast %cst_182 : f32 to vector<8x128xf32>
    %192 = arith.maximumf %190, %191 : vector<8x128xf32>
    %193 = arith.truncf %192 : vector<8x128xf32> to vector<8x128xbf16>
    %c0_183 = arith.constant 0 : index
    %c896 = arith.constant 896 : index
    %194 = vector.load %arg9[%c0_183, %c896] : memref<8x1024xbf16, #tpu.memory_space<vmem>>, vector<8x128xbf16>
    tpu.vector_store %arg9[%c0_183, %c896], %193 {strides = array<i32>} : memref<8x1024xbf16, #tpu.memory_space<vmem>>, vector<8x128xbf16>,
    %c0_184 = arith.constant 0 : index
    %c0_185 = arith.constant 0 : index
    %195 = vector.load %arg9[%c0_184, %c0_185] : memref<8x1024xbf16, #tpu.memory_space<vmem>>, vector<8x1024xbf16>
    %c0_186 = arith.constant 0 : index
    %c0_187 = arith.constant 0 : index
    %196 = vector.load %arg4[%c0_186, %c0_187] : memref<1024x128xbf16, #tpu.memory_space<vmem>>, vector<1024x128xbf16>
    %cst_188 = arith.constant dense<0.000000e+00> : vector<8x128xf32>
    %197 = tpu.matmul %195, %196, %cst_188 {dimension_numbers = #tpu.dot_dimension_numbers<[1], [0], [0], [1], [0, 0, 1, 1], [], []>} : vector<8x1024xbf16>, vector<1024x128xbf16>, vector<8x128xf32> -> vector<8x128xf32>
    %c0_189 = arith.constant 0 : index
    %c0_190 = arith.constant 0 : index
    %198 = vector.load %arg5[%c0_189, %c0_190] : memref<1x128xf32, #tpu.memory_space<vmem>>, vector<1x128xf32>
    %199 = vector.broadcast %198 : vector<1x128xf32> to vector<8x128xf32>
    %200 = arith.addf %197, %199 : vector<8x128xf32>
    %cst_191 = arith.constant 0.000000e+00 : f32
    %201 = vector.broadcast %cst_191 : f32 to vector<8x128xf32>
    %202 = arith.maximumf %200, %201 : vector<8x128xf32>
    %203 = arith.truncf %202 : vector<8x128xf32> to vector<8x128xbf16>
    %c0_192 = arith.constant 0 : index
    %c0_193 = arith.constant 0 : index
    %204 = vector.load %arg6[%c0_192, %c0_193] : memref<128x128xbf16, #tpu.memory_space<vmem>>, vector<128x128xbf16>
    %cst_194 = arith.constant dense<0.000000e+00> : vector<8x128xf32>
    %205 = tpu.matmul %203, %204, %cst_194 {dimension_numbers = #tpu.dot_dimension_numbers<[1], [0], [0], [1], [0, 0, 1, 1], [], []>} : vector<8x128xbf16>, vector<128x128xbf16>, vector<8x128xf32> -> vector<8x128xf32>
    %c0_195 = arith.constant 0 : index
    %c0_196 = arith.constant 0 : index
    %206 = vector.load %arg7[%c0_195, %c0_196] : memref<1x128xf32, #tpu.memory_space<vmem>>, vector<1x128xf32>
    %207 = vector.broadcast %206 : vector<1x128xf32> to vector<8x128xf32>
    %208 = arith.addf %205, %207 : vector<8x128xf32>
    %c0_197 = arith.constant 0 : index
    %c0_198 = arith.constant 0 : index
    %209 = vector.load %arg8[%c0_197, %c0_198] : memref<8x128xf32, #tpu.memory_space<vmem>>, vector<8x128xf32>
    tpu.vector_store %arg8[%c0_197, %c0_198], %208 {strides = array<i32>} : memref<8x128xf32, #tpu.memory_space<vmem>>, vector<8x128xf32>,
    return
  }
  func.func @transform_0(%arg0: i32) -> (i32, i32, i32) {
    %c0_i32 = arith.constant 0 : i32
    %c0_i32_0 = arith.constant 0 : i32
    %c0_i32_1 = arith.constant 0 : i32
    return %c0_i32, %arg0, %c0_i32_0 : i32, i32, i32
  }
  func.func @transform_1(%arg0: i32) -> (i32, i32, i32) {
    %c0_i32 = arith.constant 0 : i32
    %c0_i32_0 = arith.constant 0 : i32
    %c0_i32_1 = arith.constant 0 : i32
    %c0_i32_2 = arith.constant 0 : i32
    return %c0_i32, %c0_i32_0, %c0_i32_1 : i32, i32, i32
  }
  func.func @transform_2(%arg0: i32) -> (i32, i32) {
    %c0_i32 = arith.constant 0 : i32
    %c0_i32_0 = arith.constant 0 : i32
    %c0_i32_1 = arith.constant 0 : i32
    return %c0_i32, %c0_i32_0 : i32, i32
  }
  func.func @transform_3(%arg0: i32) -> (i32, i32) {
    %c0_i32 = arith.constant 0 : i32
    %c0_i32_0 = arith.constant 0 : i32
    %c0_i32_1 = arith.constant 0 : i32
    return %c0_i32, %c0_i32_0 : i32, i32
  }
  func.func @transform_4(%arg0: i32) -> (i32, i32) {
    %c0_i32 = arith.constant 0 : i32
    %c0_i32_0 = arith.constant 0 : i32
    %c0_i32_1 = arith.constant 0 : i32
    return %c0_i32, %c0_i32_0 : i32, i32
  }
  func.func @transform_5(%arg0: i32) -> (i32, i32) {
    %c0_i32 = arith.constant 0 : i32
    %c0_i32_0 = arith.constant 0 : i32
    %c0_i32_1 = arith.constant 0 : i32
    return %c0_i32, %c0_i32_0 : i32, i32
  }
  func.func @transform_6(%arg0: i32) -> (i32, i32) {
    %c0_i32 = arith.constant 0 : i32
    %c0_i32_0 = arith.constant 0 : i32
    %c0_i32_1 = arith.constant 0 : i32
    return %c0_i32, %c0_i32_0 : i32, i32
  }
  func.func @transform_7(%arg0: i32) -> (i32, i32) {
    %c0_i32 = arith.constant 0 : i32
    %c0_i32_0 = arith.constant 0 : i32
    return %arg0, %c0_i32 : i32, i32
  }
}

</mosaic_0001>

<bundles_post_ra>
// kernel: tpu_custom_call.1
= control target key start
LH: loop header
LB: loop body
LE: loop exit
PB: predicated region body
PF: predicated region fallthrough
CT: control target
= control target key end

     0   :  { %12 = vsyncpa [#allocation4], 0  ;;  %s3842_s0 = inlined_call_operand.hbm [shape: bf16[10,8,40], index: 0, kind: input, shape index: {}]   ;;  %s3843_s1 = inlined_call_operand.hbm [shape: bf16[3,40,128], index: 1, kind: input, shape index: {}]   ;;  %s3844_s2 = inlined_call_operand.vmem [shape: f32[1,128], index: 2, kind: input, shape index: {}]   ;;  %s3845_s3 = inlined_call_operand.hbm [shape: bf16[1024,128], index: 3, kind: input, shape index: {}]   ;;  %s3846_s4 = inlined_call_operand.vmem [shape: f32[1,128], index: 4, kind: input, shape index: {}]   ;;  %s3847_s5 = inlined_call_operand.hbm [shape: bf16[128,128], index: 5, kind: input, shape index: {}]   ;;  %s3848_s6 = inlined_call_operand.vmem [shape: f32[1,128], index: 6, kind: input, shape index: {}]   ;;  %s3849_s7 = inlined_call_operand.hbm [shape: f32[8,128], index: 7, kind: output, shape index: {}]  }
   0x1   :  { %13 = vsyncpa [#allocation7], 0 }
   0x2   :  { %14 = vsyncpa [#allocation10], 0 }
   0x3   :  { %15 = vsyncpa [#allocation5], 0  ;;  %s3504_s24 = smov [#allocation6]   ;;  %s3505_s26 = smov [#allocation3]  }
   0x4   :  { %s33_s25 = sshll.u32 %s3504_s24, 4  ;;  %s21_s27 = sshll.u32 %s3505_s26, 4  ;;  %s34_s25 = int_to_ptr.vmem [resolvable:$true] %s33_s25  ;;  %s3553_s27 = int_to_ptr.vmem [resolvable:$true] %s21_s27 }
   0x5   :  { %s3386_s30 = scalar_lea.hbm %s3843_s1, 960 }
   0x6   :  { %p3387_p0 = scmp.ne.s32.totalorder %s3843_s1, %s3386_s30  ;;  %p3390_p1 = scmp.lt.u32.totalorder %s3386_s30, %s3843_s1 }
   0x8   :  { %p3392_p2 = pnand %p3390_p1, %p3387_p0 }
   0xa   :  { %3395 = shalt.err (!%p3392_p2)
}
   0xb   :  { %s3396_s12 = scalar_lea.vmem %s34_s25, 960  ;;  %p3401_p4 = scmp.lt.s32.totalorder %s34_s25, %s34_s25 }
   0xc   :  { %p3397_p3 = scmp.ne.s32.totalorder %s34_s25, %s3396_s12  ;;  %p3402_p5 = scmp.lt.s32.totalorder %s3396_s12, %s3396_s12 }
   0xe   :  { %p3403_p6 = por %p3402_p5, %p3401_p4 }
  0x10   :  { %p3404_p7 = pnand %p3403_p6, %p3397_p3 }
  0x12   :  { %3407 = shalt.err (!%p3404_p7)
}
  0x13   :  { %s3506_s13 = smov 64   ;;  %s3507_s14 = smov 4  }
  0x14   :  { %39 = dma.hbm_to_vmem [thread:$0]  %s3843_s1, 960, %s34_s25, [#allocation7], %s3506_s13, %s3506_s13, %s3507_s14  }
  0x15   :  { %s3408_s19 = scalar_lea.hbm %s3842_s0, 640 }
  0x16   :  { %p3409_p8 = scmp.ne.s32.totalorder %s3842_s0, %s3408_s19  ;;  %p3412_p9 = scmp.lt.u32.totalorder %s3408_s19, %s3842_s0 }
  0x18   :  { %p3414_p10 = pnand %p3412_p9, %p3409_p8 }
  0x1a   :  { %3417 = shalt.err (!%p3414_p10)
}
  0x1b   :  { %s3418_s24 = scalar_lea.vmem %s3553_s27, 640  ;;  %p3423_p12 = scmp.lt.s32.totalorder %s3553_s27, %s3553_s27 }
  0x1c   :  { %p3419_p11 = scmp.ne.s32.totalorder %s3553_s27, %s3418_s24  ;;  %p3424_p13 = scmp.lt.s32.totalorder %s3418_s24, %s3418_s24 }
  0x1e   :  { %p3425_p0 = por %p3424_p13, %p3423_p12 }
  0x20   :  { %p3426_p1 = pnand %p3425_p0, %p3419_p11 }
  0x22   :  { %3429 = shalt.err (!%p3426_p1)
}
  0x23   :  { %27 = dma.hbm_to_vmem [thread:$0]  %s3842_s0, 640, %s3553_s27, [#allocation4], %s3506_s13, %s3506_s13, %s3507_s14  }
  0x24   :  { %s3508_s26 = smov [#allocation8]   ;;  %s3509_s29 = smov [#allocation9]  }
  0x25   :  { %s47_s28 = sshll.u32 %s3508_s26, 4  ;;  %s61_s30 = sshll.u32 %s3509_s29, 4  ;;  %s48_s28 = int_to_ptr.vmem [resolvable:$true] %s47_s28  ;;  %s3590_s30 = int_to_ptr.vmem [resolvable:$true] %s61_s30 }
  0x26   :  { %s3430_s10 = scalar_lea.hbm %s3845_s3, 8192 }
  0x27   :  { %p3431_p2 = scmp.ne.s32.totalorder %s3845_s3, %s3430_s10  ;;  %p3434_p3 = scmp.lt.u32.totalorder %s3430_s10, %s3845_s3 }
  0x29   :  { %p3436_p4 = pnand %p3434_p3, %p3431_p2 }
  0x2b   :  { %3439 = shalt.err (!%p3436_p4)
}
  0x2c   :  { %s3440_s0 = scalar_lea.vmem %s48_s28, 8192  ;;  %p3445_p6 = scmp.lt.s32.totalorder %s48_s28, %s48_s28 }
  0x2d   :  { %p3441_p5 = scmp.ne.s32.totalorder %s48_s28, %s3440_s0  ;;  %p3446_p7 = scmp.lt.s32.totalorder %s3440_s0, %s3440_s0 }
  0x2f   :  { %p3447_p8 = por %p3446_p7, %p3445_p6 }
  0x31   :  { %p3448_p9 = pnand %p3447_p8, %p3441_p5 }
  0x33   :  { %3451 = shalt.err (!%p3448_p9)
}
  0x34   :  { %53 = dma.hbm_to_vmem [thread:$0]  %s3845_s3, 8192, %s48_s28, [#allocation7], %s3506_s13, %s3506_s13, %s3507_s14  }
  0x35   :  { %s3452_s20 = scalar_lea.hbm %s3847_s5, 1024 }
  0x36   :  { %p3453_p10 = scmp.ne.s32.totalorder %s3847_s5, %s3452_s20  ;;  %p3456_p11 = scmp.lt.u32.totalorder %s3452_s20, %s3847_s5 }
  0x38   :  { %p3458_p12 = pnand %p3456_p11, %p3453_p10 }
  0x3a   :  { %3461 = shalt.err (!%p3458_p12)
}
  0x3b   :  { %s3462_s1 = scalar_lea.vmem %s3590_s30, 1024  ;;  %p3467_p0 = scmp.lt.s32.totalorder %s3590_s30, %s3590_s30 }
  0x3c   :  { %p3463_p13 = scmp.ne.s32.totalorder %s3590_s30, %s3462_s1  ;;  %p3468_p1 = scmp.lt.s32.totalorder %s3462_s1, %s3462_s1 }
  0x3e   :  { %p3469_p2 = por %p3468_p1, %p3467_p0 }
  0x40   :  { %p3470_p3 = pnand %p3469_p2, %p3463_p13 }
  0x42   :  { %3473 = shalt.err (!%p3470_p3)
}
  0x43   :  { %67 = dma.hbm_to_vmem [thread:$0]  %s3847_s5, 1024, %s3590_s30, [#allocation10], %s3506_s13, %s3506_s13, %s3507_s14  }
  0x44   :  { %3496 = dma.done.wait [#allocation4], 640  }
  0x45   :  { %3497 = vsyncadd [#allocation4], 4294966656 }
  0x46   :  { %3498 = dma.done.wait [#allocation7], 9152  }
  0x47   :  { %3499 = vsyncadd [#allocation7], 4294958144 }
  0x48   :  { %3500 = dma.done.wait [#allocation10], 1024  }
  0x49   :  { %3501 = vsyncadd [#allocation10], 4294966272  ;;  %v3510_v0 = vmov 0.0   ;;  %vm3511_vm0 = vmmov 0   ;;  %v3234_v1 = vld [vmem:[#allocation6 + $0x14] sm:$0xff]   ;;  %v3235_v2 = vld [vmem:[#allocation6 + $0x1c] sm:$0xff]  }
  0x4a   :  { %2965 = vmatprep.subr.bf16.mxu1 %v3510_v0  ;;  %2971 = vmatprep.mubr.msk.bf16.mxu1 %vm3511_vm0, %v3510_v0  ;;  %v3236_v3 = vld [vmem:[#allocation6 + $0x24] ss:$0 sps:$4 sm:$0xff]   ;;  %vm123_vm1 = vcmask 1043456   ;;  %v3238_v4 = vld [vmem:[#allocation6 + $0x28] sm:$0xff]   ;;  %v3240_v5 = vld [vmem:[#allocation6 + $0x30] sm:$0xff]   ;;  %vm119_vm2 = vcmask 326656  }
  0x4b   :  { %2985 = vmatprep.subr.bf16.mxu0 %v3510_v0  ;;  %2991 = vmatprep.mubr.msk.bf16.mxu0 %vm3511_vm0, %v3510_v0  ;;  %v125_v6 = vsel %vm123_vm1, %v3236_v3, 0  ;;  %v3242_v7 = vld [vmem:[#allocation6 + $0x38] ss:$0 sps:$4 sm:$0xff]   ;;  %v97_v8 = vld [vmem:[#allocation3 + $0x4] sm:$0xf]  ;;  %v3237_v9 = vld [vmem:[#allocation6] sm:$0xff]  }
  0x4c   :  { %2966 = vmatpush3.bf16.msra.mxu1 %v3234_v1  ;;  %2986 = vmatpush3.bf16.msra.mxu0 %v3238_v4  ;;  %v255_v10 = vsel %vm123_vm1, %v3242_v7, 0  ;;  %v3239_v11 = vld [vmem:[#allocation6 + $0x8] sm:$0xff]   ;;  %v3241_v12 = vld [vmem:[#allocation6 + $0x10] ss:$0 sps:$4 sm:$0xff]   ;;  %v229_v13 = vld [vmem:[#allocation3 + $0x8] sm:$0xf] }
  0x4d   :  { %2967 = vmatprep.subr.bf16.mxu1 %v3510_v0  ;;  %2987 = vmatprep.subr.bf16.mxu0 %v3510_v0  ;;  %v3244_v14 = vld [vmem:[#allocation6] sm:$0xff]   ;;  %v186_v15 = vsel %vm123_vm1, %v3241_v12, 0  ;;  %v3246_v16 = vld [vmem:[#allocation6 + $0x8] sm:$0xff]   ;;  %v3248_v17 = vld [vmem:[#allocation6 + $0x10] ss:$0 sps:$4 sm:$0xff]   ;;  %s3512_s28 = smov [#allocation11]  }
  0x4e   :  { %v90_v18 = vld [vmem:[#allocation3] sm:$0xf]  ;;  %v394_v20 = vsel %vm123_vm1, %v3248_v17, 0  ;;  %v3245_v21 = vld [vmem:[#allocation6 + $0x1c] sm:$0xff]   ;;  %v3247_v22 = vld [vmem:[#allocation6 + $0x24] ss:$0 sps:$4 sm:$0xff]  }
  0x4f   :  { %v3243_v19 = vld [vmem:[#allocation6 + $0x14] sm:$0xff]   ;;  %v302_v23 = vld [vmem:[#allocation3 + $0x4] sm:$0xf]  ;;  %v333_v25 = vsel %vm123_vm1, %v3247_v22, 0  ;;  %v3254_v27 = vld [vmem:[#allocation6 + $0x24] ss:$0 sps:$4 sm:$0xff]  }
  0x50   :  { %2968 = vmatpush3.bf16.msra.mxu1 %v3235_v2  ;;  %2988 = vmatpush3.bf16.msra.mxu0 %v3240_v5  ;;  %v3250_v24 = vld [vmem:[#allocation6 + $0x14] sm:$0xff]   ;;  %v3252_v26 = vld [vmem:[#allocation6 + $0x1c] sm:$0xff]   ;;  %v3249_v29 = vld [vmem:[#allocation6 + $0x28] sm:$0xff]   ;;  %v540_v30 = vsel %vm123_vm1, %v3254_v27, 0  ;;  %s2582_s29 = sshll.u32 %s3512_s28, 4  ;;  %s2583_s29 = int_to_ptr.vmem [resolvable:$true] %s2582_s29 }
  0x51   :  { %2969 = vmatprep.subr.bf16.mxu1 %v3510_v0  ;;  %2989 = vmatprep.subr.bf16.mxu0 %v3510_v0  ;;  %v308_v28 = vld [vmem:[#allocation3 + $0x8] sm:$0xf]  ;;  %v3251_v31 = vld [vmem:[#allocation6 + $0x30] sm:$0xff]   ;;  %v3253_v32 = vld [vmem:[#allocation6 + $0x38] ss:$0 sps:$4 sm:$0xff]   ;;  %s3474_s30 = scalar_lea.vmem %s2583_s29, 128  ;;  %p3479_p5 = scmp.lt.s32.totalorder %s2583_s29, %s2583_s29 }
  0x52   :  { %v515_v33 = vld [vmem:[#allocation3 + $0xc] sm:$0xf]  ;;  %v3256_v34 = vld [vmem:[#allocation6 + $0x28] sm:$0xff]   ;;  %v462_v35 = vsel %vm123_vm1, %v3253_v32, 0  ;;  %v3258_v36 = vld [vmem:[#allocation6 + $0x30] sm:$0xff]   ;;  %p3475_p4 = scmp.ne.s32.totalorder %s2583_s29, %s3474_s30  ;;  %p3480_p6 = scmp.lt.s32.totalorder %s3474_s30, %s3474_s30 }
  0x53   :  { %v3260_v37 = vld [vmem:[#allocation6 + $0x38] ss:$0 sps:$4 sm:$0xff]   ;;  %v437_v38 = vld [vmem:[#allocation3 + $0xc] sm:$0xf]  ;;  %v3257_v41 = vld [vmem:[#allocation6 + $0x8] sm:$0xff]  }
  0x54   :  { %2970 = vmatpush3.bf16.msra.mxu1 %v125_v6  ;;  %2990 = vmatpush3.bf16.msra.mxu0 %v255_v10  ;;  %v3255_v39 = vld [vmem:[#allocation6] sm:$0xff]   ;;  %v669_v40 = vsel %vm123_vm1, %v3260_v37, 0  ;;  %v3259_v42 = vld [vmem:[#allocation6 + $0x10] ss:$0 sps:$4 sm:$0xff]   ;;  %v644_v43 = vld [vmem:[#allocation3 + $0x10] sm:$0xf]  ;;  %p3481_p7 = por %p3480_p6, %p3479_p5 }
  0x55   :  { %2975 = vmatprep.subr.bf16.mxu1 %v3510_v0  ;;  %3005 = vmatprep.subr.bf16.mxu0 %v3510_v0  ;;  %v3262_v44 = vld [vmem:[#allocation6] sm:$0xff]   ;;  %v601_v45 = vsel %vm123_vm1, %v3259_v42, 0  ;;  %v3264_v46 = vld [vmem:[#allocation6 + $0x8] sm:$0xff]   ;;  %v3266_v47 = vld [vmem:[#allocation6 + $0x10] ss:$0 sps:$4 sm:$0xff]  }
  0x56   :  { %v509_v48 = vld [vmem:[#allocation3 + $0x8] sm:$0xf]  ;;  %v3261_v49 = vld [vmem:[#allocation6 + $0x14] sm:$0xff]   ;;  %v3265_v50 = vld [vmem:[#allocation6 + $0x24] ss:$0 sps:$4 sm:$0xff]   ;;  %v808_v51 = vsel %vm123_vm1, %v3266_v47, 0  ;;  %p3482_p8 = pnand %p3481_p7, %p3475_p4 }
  0x57   :  { %2972 = vmatmul.mubr.msk.bf16.vlgmr.msra.gmra.mrb[0].mxu1 %vm119_vm2, %v97_v8  ;;  %2992 = vmatmul.mubr.msk.bf16.vlgmr.msra.gmra.mrb[0].mxu0 %vm119_vm2, %v229_v13  ;;  %v3263_v52 = vld [vmem:[#allocation6 + $0x1c] sm:$0xff]   ;;  %v716_v53 = vld [vmem:[#allocation3 + $0xc] sm:$0xf]  ;;  %v3268_v54 = vld [vmem:[#allocation6 + $0x14] sm:$0xff]   ;;  %v747_v55 = vsel %vm123_vm1, %v3265_v50, 0 }
  0x58   :  { %2976 = vmatpush3.bf16.msra.mxu1 %v3237_v9  ;;  %2981 = vmatprep.mubr.msk.bf16.mxu1 %vm3511_vm0, %v3510_v0  ;;  %v3270_v56 = vld [vmem:[#allocation6 + $0x1c] sm:$0xff]   ;;  %v3271_v57 = vld [vmem:[#allocation6 + $0x38] ss:$0 sps:$4 sm:$0xff]   ;;  %v3272_v58 = vld [vmem:[#allocation6 + $0x24] ss:$0 sps:$4 sm:$0xff]  }
  0x59   :  { %2977 = vmatprep.subr.bf16.mxu1 %v3510_v0  ;;  %3006 = vmatpush3.bf16.msra.mxu0 %v3244_v14  ;;  %v3277_v59 = vld [vmem:[#allocation6 + $0x10] ss:$0 sps:$4 sm:$0xff]   ;;  %v3278_v60 = vld [vmem:[#allocation6 + $0x38] ss:$0 sps:$4 sm:$0xff]   ;;  %v3283_v61 = vld [vmem:[#allocation6 + $0x24] ss:$0 sps:$4 sm:$0xff]  }
  0x5a   :  { %3007 = vmatprep.subr.bf16.mxu0 %v3510_v0  ;;  %3011 = vmatprep.mubr.msk.bf16.mxu0 %vm3511_vm0, %v3510_v0  ;;  %v722_v62 = vld [vmem:[#allocation3 + $0x10] sm:$0xf]  ;;  %v3284_v63 = vld [vmem:[#allocation6 + $0x10] ss:$0 sps:$4 sm:$0xff]   ;;  %v3290_v1 = vld [vmem:[#allocation6 + $0x24] ss:$0 sps:$4 sm:$0xff]  }
  0x5b   :  { %v3267_v2 = vld [vmem:[#allocation6 + $0x28] sm:$0xff]   ;;  %v876_v3 = vsel %vm123_vm1, %v3271_v57, 0  ;;  %v954_v4 = vsel %vm123_vm1, %v3272_v58, 0  ;;  %v1015_v5 = vsel %vm123_vm1, %v3277_v59, 0  ;;  %v1083_v6 = vsel %vm123_vm1, %v3278_v60, 0  ;;  %v3269_v8 = vld [vmem:[#allocation6 + $0x30] sm:$0xff]  }
  0x5c   :  { %2978 = vmatpush3.bf16.msra.mxu1 %v3239_v11  ;;  %v3714_v7 = vsel %vm123_vm1, %v3283_v61, 0  ;;  %v929_v9 = vld [vmem:[#allocation3 + $0x14] sm:$0xf]  ;;  %v1222_v11 = vsel %vm123_vm1, %v3284_v63, 0  ;;  %v3719_v12 = vsel %vm123_vm1, %v3290_v1, 0  ;;  %v3276_v13 = vld [vmem:[#allocation6 + $0x30] sm:$0xff]  }
  0x5d   :  { %2979 = vmatprep.subr.bf16.mxu1 %v3510_v0  ;;  %3008 = vmatpush3.bf16.msra.mxu0 %v3246_v16  ;;  %v3274_v10 = vld [vmem:[#allocation6 + $0x28] sm:$0xff]   ;;  %v1058_v17 = vld [vmem:[#allocation3 + $0x18] sm:$0xf]  ;;  %v3281_v22 = vld [vmem:[#allocation6 + $0x1c] sm:$0xff]  }
  0x5e   :  { %3009 = vmatprep.subr.bf16.mxu0 %v3510_v0  ;;  %v851_v14 = vld [vmem:[#allocation3 + $0x14] sm:$0xf]  ;;  %v1544_v50 = vld [vmem:[#allocation3 + $0x1c] sm:$0xf]  ;;  %v1550_v57 = vld [vmem:[#allocation3 + $0x20] sm:$0xf] }
  0x5f   :  { %v3275_v16 = vld [vmem:[#allocation6 + $0x8] sm:$0xff]   ;;  %v3312_v60 = vld [vmem:[#allocation8 + $0x58] sm:$0xff]   ;;  %v3314_v1 = vld [vmem:[#allocation8 + $0x60] sm:$0xff]  }
  0x60   :  { %2980 = vmatpush3.bf16.msra.mxu1 %v186_v15  ;;  %v3273_v15 = vld [vmem:[#allocation6] sm:$0xff]   ;;  %v3285_v27 = vld [vmem:[#allocation6 + $0x28] sm:$0xff]   ;;  %v3304_v61 = vld [vmem:[#allocation6 + $0x30] sm:$0xff]  }
  0x61   :  { %2995 = vmatprep.subr.bf16.mxu1 %v3510_v0  ;;  %3010 = vmatpush3.bf16.msra.mxu0 %v394_v20  ;;  %v923_v20 = vld [vmem:[#allocation3 + $0x10] sm:$0xf]  ;;  %v3311_v59 = vld [vmem:[#allocation8 + $0x10] sm:$0xff]   ;;  %v3313_v63 = vld [vmem:[#allocation8 + $0x18] sm:$0xff]  }
  0x62   :  { %3025 = vmatprep.subr.bf16.mxu0 %v3510_v0  ;;  %v3292_v32 = vld [vmem:[#allocation6 + $0x28] sm:$0xff]  }
  0x63   :  { %2982 = vmatmul.mubr.msk.bf16.vlgmr.msra.gmra.mrb[4].mxu1 %vm119_vm2, %v90_v18  ;;  %v3280_v18 = vld [vmem:[#allocation6] sm:$0xff]   ;;  %v3300_v42 = vld [vmem:[#allocation6 + $0x8] sm:$0xff]  }
  0x64   :  { %2996 = vmatpush3.bf16.msra.mxu1 %v3243_v19  ;;  %3001 = vmatprep.mubr.msk.bf16.mxu1 %vm3511_vm0, %v3510_v0  ;;  %v3282_v19 = vld [vmem:[#allocation6 + $0x8] sm:$0xff]  }
  0x65   :  { %2997 = vmatprep.subr.bf16.mxu1 %v3510_v0  ;;  %3012 = vmatmul.mubr.msk.bf16.vlgmr.msra.gmra.mrb[4].mxu0 %vm119_vm2, %v302_v23  ;;  %v1130_v23 = vld [vmem:[#allocation3 + $0x14] sm:$0xf] }
  0x66   :  { %3026 = vmatpush3.bf16.msra.mxu0 %v3250_v24  ;;  %3031 = vmatprep.mubr.msk.bf16.mxu0 %vm3511_vm0, %v3510_v0  ;;  %v3286_v24 = vld [vmem:[#allocation6 + $0x14] sm:$0xff]   ;;  %v3303_v58 = vld [vmem:[#allocation6 + $0x28] sm:$0xff]  }
  0x67   :  { %3027 = vmatprep.subr.bf16.mxu0 %v3510_v0 }
  0x68   :  { %2998 = vmatpush3.bf16.msra.mxu1 %v3245_v21  ;;  %v3279_v21 = vld [vmem:[#allocation6 + $0x14] sm:$0xff]  }
  0x69   :  { %2999 = vmatprep.subr.bf16.mxu1 %v3510_v0 }
  0x6a   :  { %3028 = vmatpush3.bf16.msra.mxu0 %v3252_v26  ;;  %v1136_v26 = vld [vmem:[#allocation3 + $0x18] sm:$0xf] }
  0x6b   :  { %3029 = vmatprep.subr.bf16.mxu0 %v3510_v0 }
  0x6c   :  { %3000 = vmatpush3.bf16.msra.mxu1 %v333_v25  ;;  %v3288_v25 = vld [vmem:[#allocation6 + $0x1c] sm:$0xff]  }
  0x6d   :  { %3015 = vmatprep.subr.bf16.mxu1 %v3510_v0 }
  0x6e   :  { %3030 = vmatpush3.bf16.msra.mxu0 %v540_v30  ;;  %v1343_v30 = vld [vmem:[#allocation3 + $0x1c] sm:$0xf] }
  0x6f   :  { %3002 = vmatmul.mubr.msk.bf16.vlgmr.msra.gmra.mrb[8].mxu1 %vm119_vm2, %v308_v28  ;;  %3045 = vmatprep.subr.bf16.mxu0 %v3510_v0  ;;  %v3289_v28 = vld [vmem:[#allocation6 + $0x38] ss:$0 sps:$4 sm:$0xff]  }
  0x70   :  { %3016 = vmatpush3.bf16.msra.mxu1 %v3249_v29  ;;  %3021 = vmatprep.mubr.msk.bf16.mxu1 %vm3511_vm0, %v3510_v0  ;;  %v3287_v29 = vld [vmem:[#allocation6 + $0x30] sm:$0xff]  }
  0x71   :  { %3017 = vmatprep.subr.bf16.mxu1 %v3510_v0  ;;  %3032 = vmatmul.mubr.msk.bf16.vlgmr.msra.gmra.mrb[8].mxu0 %vm119_vm2, %v515_v33  ;;  %v3294_v33 = vld [vmem:[#allocation6 + $0x30] sm:$0xff]  }
  0x72   :  { %3046 = vmatpush3.bf16.msra.mxu0 %v3256_v34  ;;  %3051 = vmatprep.mubr.msk.bf16.mxu0 %vm3511_vm0, %v3510_v0  ;;  %v3296_v34 = vld [vmem:[#allocation6 + $0x38] ss:$0 sps:$4 sm:$0xff]  }
  0x73   :  { %3047 = vmatprep.subr.bf16.mxu0 %v3510_v0  ;;  %v1497_v37 = vsel %vm123_vm1, %v3296_v34, 0 }
  0x74   :  { %3018 = vmatpush3.bf16.msra.mxu1 %v3251_v31  ;;  %v1290_v31 = vsel %vm123_vm1, %v3289_v28, 0 }
  0x75   :  { %3019 = vmatprep.subr.bf16.mxu1 %v3510_v0 }
  0x76   :  { %3048 = vmatpush3.bf16.msra.mxu0 %v3258_v36  ;;  %v3291_v36 = vld [vmem:[#allocation6] sm:$0xff]  }
  0x77   :  { %3049 = vmatprep.subr.bf16.mxu0 %v3510_v0 }
  0x78   :  { %3020 = vmatpush3.bf16.msra.mxu1 %v462_v35  ;;  %v1265_v35 = vld [vmem:[#allocation3 + $0x1c] sm:$0xf] }
  0x79   :  { %3035 = vmatprep.subr.bf16.mxu1 %v3510_v0 }
  0x7a   :  { %3050 = vmatpush3.bf16.msra.mxu0 %v669_v40  ;;  %v3298_v40 = vld [vmem:[#allocation6] sm:$0xff]  }
  0x7b   :  { %3022 = vmatmul.mubr.msk.bf16.vlgmr.msra.gmra.mrb[12].mxu1 %vm119_vm2, %v437_v38  ;;  %3065 = vmatprep.subr.bf16.mxu0 %v3510_v0  ;;  %v3293_v38 = vld [vmem:[#allocation6 + $0x8] sm:$0xff]  }
  0x7c   :  { %3036 = vmatpush3.bf16.msra.mxu1 %v3255_v39  ;;  %3041 = vmatprep.mubr.msk.bf16.mxu1 %vm3511_vm0, %v3510_v0  ;;  %v1472_v39 = vld [vmem:[#allocation3 + $0x20] sm:$0xf] }
  0x7d   :  { %3037 = vmatprep.subr.bf16.mxu1 %v3510_v0  ;;  %3052 = vmatmul.mubr.msk.bf16.vlgmr.msra.gmra.mrb[12].mxu0 %vm119_vm2, %v644_v43 }
  0x7e   :  { %3066 = vmatpush3.bf16.msra.mxu0 %v3262_v44  ;;  %3071 = vmatprep.mubr.msk.bf16.mxu0 %vm3511_vm0, %v3510_v0  ;;  %v3302_v44 = vld [vmem:[#allocation6 + $0x10] ss:$0 sps:$4 sm:$0xff]  }
  0x7f   :  { %3067 = vmatprep.subr.bf16.mxu0 %v3510_v0  ;;  %v1636_v47 = vsel %vm123_vm1, %v3302_v44, 0 }
  0x80   :  { %3038 = vmatpush3.bf16.msra.mxu1 %v3257_v41  ;;  %v3295_v41 = vld [vmem:[#allocation6 + $0x10] ss:$0 sps:$4 sm:$0xff]  }
  0x81   :  { %3039 = vmatprep.subr.bf16.mxu1 %v3510_v0  ;;  %v1429_v43 = vsel %vm123_vm1, %v3295_v41, 0  ;;  %v3804_v41 = vld [vmem:[%s3844_s2] ss:$0 sm:$0xff] }
  0x82   :  { %3068 = vmatpush3.bf16.msra.mxu0 %v3264_v46  ;;  %v3297_v46 = vld [vmem:[#allocation6 + $0x14] sm:$0xff]  }
  0x83   :  { %3069 = vmatprep.subr.bf16.mxu0 %v3510_v0 }
  0x84   :  { %3040 = vmatpush3.bf16.msra.mxu1 %v601_v45  ;;  %v1337_v45 = vld [vmem:[#allocation3 + $0x18] sm:$0xf] }
  0x85   :  { %3055 = vmatprep.subr.bf16.mxu1 %v3510_v0 }
  0x86   :  { %3070 = vmatpush3.bf16.msra.mxu0 %v808_v51  ;;  %v3307_v51 = vld [vmem:[#allocation8] sm:$0xff]  }
  0x87   :  { %3042 = vmatmul.mubr.msk.bf16.vlgmr.msra.gmra.mrb[16].mxu1 %vm119_vm2, %v509_v48  ;;  %3085 = vmatprep.subr.bf16.mxu0 %v3510_v0  ;;  %v3306_v48 = vld [vmem:[#allocation8 + $0x40] sm:$0xff]  }
  0x88   :  { %3056 = vmatpush3.bf16.msra.mxu1 %v3261_v49  ;;  %3061 = vmatprep.mubr.msk.bf16.mxu1 %vm3511_vm0, %v3510_v0  ;;  %v3299_v49 = vld [vmem:[#allocation6 + $0x1c] sm:$0xff]  }
  0x89   :  { %3057 = vmatprep.subr.bf16.mxu1 %v3510_v0  ;;  %3072 = vmatmul.mubr.msk.bf16.vlgmr.msra.gmra.mrb[16].mxu0 %vm119_vm2, %v716_v53  ;;  %v3308_v53 = vld [vmem:[#allocation8 + $0x48] sm:$0xff]  }
  0x8a   :  { %3086 = vmatpush3.bf16.msra.mxu0 %v3268_v54  ;;  %3091 = vmatprep.mubr.msk.bf16.mxu0 %vm3511_vm0, %v3510_v0  ;;  %v3309_v54 = vld [vmem:[#allocation8 + $0x8] sm:$0xff]  }
  0x8b   :  { %3087 = vmatprep.subr.bf16.mxu0 %v3510_v0 }
  0x8c   :  { %3058 = vmatpush3.bf16.msra.mxu1 %v3263_v52  ;;  %v3301_v52 = vld [vmem:[#allocation6 + $0x24] ss:$0 sps:$4 sm:$0xff]  }
  0x8d   :  { %3059 = vmatprep.subr.bf16.mxu1 %v3510_v0 }
  0x8e   :  { %3088 = vmatpush3.bf16.msra.mxu0 %v3270_v56  ;;  %v3310_v56 = vld [vmem:[#allocation8 + $0x50] sm:$0xff]  }
  0x8f   :  { %3089 = vmatprep.subr.bf16.mxu0 %v3510_v0 }
  0x90   :  { %3060 = vmatpush3.bf16.msra.mxu1 %v747_v55  ;;  %v1575_v55 = vsel %vm123_vm1, %v3301_v52, 0 }
  0x91   :  { %3075 = vmatprep.subr.bf16.mxu1 %v3510_v0 }
  0x92   :  { %3090 = vmatpush3.bf16.msra.mxu0 %v954_v4  ;;  %v3316_v4 = vld [vmem:[#allocation8 + $0x68] sm:$0xff]  }
  0x93   :  { %3062 = vmatmul.mubr.msk.bf16.vlgmr.msra.gmra.mrb[20].mxu1 %vm119_vm2, %v722_v62  ;;  %3105 = vmatprep.subr.bf16.mxu0 %v3510_v0  ;;  %v3305_v62 = vld [vmem:[#allocation6 + $0x38] ss:$0 sps:$4 sm:$0xff]  }
  0x94   :  { %3076 = vmatpush3.bf16.msra.mxu1 %v3267_v2  ;;  %3081 = vmatprep.mubr.msk.bf16.mxu1 %vm3511_vm0, %v3510_v0  ;;  %v1704_v2 = vsel %vm123_vm1, %v3305_v62, 0 }
  0x95   :  { %3077 = vmatprep.subr.bf16.mxu1 %v3510_v0  ;;  %3092 = vmatmul.mubr.msk.bf16.vlgmr.msra.gmra.mrb[20].mxu0 %vm119_vm2, %v929_v9  ;;  %v3318_v9 = vld [vmem:[#allocation8 + $0x70] sm:$0xff]  }
  0x96   :  { %3106 = vmatpush3.bf16.msra.mxu0 %v3274_v10  ;;  %3111 = vmatprep.mubr.msk.bf16.mxu0 %vm3511_vm0, %v3510_v0  ;;  %v3326_v10 = vld [vmem:[#allocation8 + $0xc8] sm:$0xff]  }
  0x97   :  { %3107 = vmatprep.subr.bf16.mxu0 %v3510_v0 }
  0x98   :  { %3078 = vmatpush3.bf16.msra.mxu1 %v3269_v8  ;;  %v3325_v8 = vld [vmem:[#allocation8 + $0x80] sm:$0xff]  }
  0x99   :  { %3079 = vmatprep.subr.bf16.mxu1 %v3510_v0 }
  0x9a   :  { %3108 = vmatpush3.bf16.msra.mxu0 %v3276_v13  ;;  %v3328_v13 = vld [vmem:[#allocation8 + $0xd0] sm:$0xff]  }
  0x9b   :  { %3109 = vmatprep.subr.bf16.mxu0 %v3510_v0 }
  0x9c   :  { %3080 = vmatpush3.bf16.msra.mxu1 %v876_v3  ;;  %v3315_v3 = vld [vmem:[#allocation8 + $0x20] sm:$0xff]  }
  0x9d   :  { %3095 = vmatprep.subr.bf16.mxu1 %v3510_v0 }
  0x9e   :  { %3110 = vmatpush3.bf16.msra.mxu0 %v1083_v6  ;;  %v3324_v6 = vld [vmem:[#allocation8 + $0xc0] sm:$0xff]  }
  0x9f   :  { %3082 = vmatmul.mubr.msk.bf16.vlgmr.msra.gmra.mrb[24].mxu1 %vm119_vm2, %v851_v14  ;;  %3125 = vmatprep.subr.bf16.mxu0 %v3510_v0  ;;  %v3320_v14 = vld [vmem:[#allocation8 + $0x78] sm:$0xff]  }
  0xa0   :  { %3096 = vmatpush3.bf16.msra.mxu1 %v3273_v15  ;;  %3101 = vmatprep.mubr.msk.bf16.mxu1 %vm3511_vm0, %v3510_v0  ;;  %v3329_v15 = vld [vmem:[#allocation8 + $0x90] sm:$0xff]  }
  0xa1   :  { %3097 = vmatprep.subr.bf16.mxu1 %v3510_v0  ;;  %3112 = vmatmul.mubr.msk.bf16.vlgmr.msra.gmra.mrb[24].mxu0 %vm119_vm2, %v1058_v17  ;;  %v3330_v17 = vld [vmem:[#allocation8 + $0xd8] sm:$0xff]  }
  0xa2   :  { %3126 = vmatpush3.bf16.msra.mxu0 %v3280_v18  ;;  %3131 = vmatprep.mubr.msk.bf16.mxu0 %vm3511_vm0, %v3510_v0  ;;  %v3331_v18 = vld [vmem:[#allocation8 + $0x98] sm:$0xff]  }
  0xa3   :  { %3127 = vmatprep.subr.bf16.mxu0 %v3510_v0 }
  0xa4   :  { %3098 = vmatpush3.bf16.msra.mxu1 %v3275_v16  ;;  %v3321_v16 = vld [vmem:[#allocation8 + $0x38] sm:$0xff]  }
  0xa5   :  { %3099 = vmatprep.subr.bf16.mxu1 %v3510_v0 }
  0xa6   :  { %3128 = vmatpush3.bf16.msra.mxu0 %v3282_v19  ;;  %v3332_v19 = vld [vmem:[#allocation8 + $0xe0] sm:$0xff]  }
  0xa7   :  { %3129 = vmatprep.subr.bf16.mxu0 %v3510_v0 }
  0xa8   :  { %3100 = vmatpush3.bf16.msra.mxu1 %v1015_v5  ;;  %v1679_v5 = vld [vmem:[#allocation3 + $0x24] sm:$0xf] }
  0xa9   :  { %3115 = vmatprep.subr.bf16.mxu1 %v3510_v0 }
  0xaa   :  { %3130 = vmatpush3.bf16.msra.mxu0 %v1222_v11  ;;  %v3319_v11 = vld [vmem:[#allocation8 + $0x30] sm:$0xff]  }
  0xab   :  { %3102 = vmatmul.mubr.msk.bf16.vlgmr.msra.gmra.mrb[28].mxu1 %vm119_vm2, %v923_v20  ;;  %3145 = vmatprep.subr.bf16.mxu0 %v3510_v0  ;;  %v3333_v20 = vld [vmem:[#allocation8 + $0xa0] sm:$0xff]  }
  0xac   :  { %3116 = vmatpush3.bf16.msra.mxu1 %v3279_v21  ;;  %3121 = vmatprep.mubr.msk.bf16.mxu1 %vm3511_vm0, %v3510_v0  ;;  %v3334_v21 = vld [vmem:[#allocation8 + $0xe8] sm:$0xff]  }
  0xad   :  { %3117 = vmatprep.subr.bf16.mxu1 %v3510_v0  ;;  %3132 = vmatmul.mubr.msk.bf16.vlgmr.msra.gmra.mrb[28].mxu0 %vm119_vm2, %v1130_v23  ;;  %v3336_v23 = vld [vmem:[#allocation8 + $0xf0] sm:$0xff]  }
  0xae   :  { %3146 = vmatpush3.bf16.msra.mxu0 %v3286_v24  ;;  %3151 = vmatprep.mubr.msk.bf16.mxu0 %vm3511_vm0, %v3510_v0  ;;  %v3337_v24 = vld [vmem:[#allocation8 + $0xb0] sm:$0xff]  }
  0xaf   :  { %3147 = vmatprep.subr.bf16.mxu0 %v3510_v0 }
  0xb0   :  { %3118 = vmatpush3.bf16.msra.mxu1 %v3281_v22  ;;  %v3335_v22 = vld [vmem:[#allocation8 + $0xa8] sm:$0xff]  }
  0xb1   :  { %3119 = vmatprep.subr.bf16.mxu1 %v3510_v0 }
  0xb2   :  { %3148 = vmatpush3.bf16.msra.mxu0 %v3288_v25  ;;  %v3338_v25 = vld [vmem:[#allocation8 + $0xf8] sm:$0xff]  }
  0xb3   :  { %3149 = vmatprep.subr.bf16.mxu0 %v3510_v0 }
  0xb4   :  { %3120 = vmatpush3.bf16.msra.mxu1 %v3714_v7  ;;  %v3317_v7 = vld [vmem:[#allocation8 + $0x28] sm:$0xff]  }
  0xb5   :  { %3135 = vmatprep.subr.bf16.mxu1 %v3510_v0 }
  0xb6   :  { %3150 = vmatpush3.bf16.msra.mxu0 %v3719_v12  ;;  %v3327_v12 = vld [vmem:[#allocation8 + $0x88] sm:$0xff]  }
  0xb7   :  { %3122 = vmatmul.mubr.msk.bf16.vlgmr.msra.gmra.mrb[32].mxu1 %vm119_vm2, %v1136_v26  ;;  %3165 = vmatprep.subr.bf16.mxu0 %v3510_v0  ;;  %v3339_v26 = vld [vmem:[#allocation8 + $0xb8] sm:$0xff]  }
  0xb8   :  { %3136 = vmatpush3.bf16.msra.mxu1 %v3285_v27  ;;  %3141 = vmatprep.mubr.msk.bf16.mxu1 %vm3511_vm0, %v3510_v0  ;;  %v3342_v27 = vld [vmem:[#allocation8 + $0x140] sm:$0xff]  }
  0xb9   :  { %3137 = vmatprep.subr.bf16.mxu1 %v3510_v0  ;;  %3152 = vmatmul.mubr.msk.bf16.vlgmr.msra.gmra.mrb[32].mxu0 %vm119_vm2, %v1343_v30 }
  0xba   :  { %3166 = vmatpush3.bf16.msra.mxu0 %v3292_v32  ;;  %3171 = vmatprep.mubr.msk.bf16.mxu0 %vm3511_vm0, %v3510_v0 }
  0xbb   :  { %3167 = vmatprep.subr.bf16.mxu0 %v3510_v0 }
  0xbc   :  { %3138 = vmatpush3.bf16.msra.mxu1 %v3287_v29 }
  0xbd   :  { %3139 = vmatprep.subr.bf16.mxu1 %v3510_v0 }
  0xbe   :  { %3168 = vmatpush3.bf16.msra.mxu0 %v3294_v33 }
  0xbf   :  { %3169 = vmatprep.subr.bf16.mxu0 %v3510_v0 }
  0xc0   :  { %3140 = vmatpush3.bf16.msra.mxu1 %v1290_v31  ;;  %v3360_v31 = vld [vmem:[#allocation8 + $0x1c0] sm:$0xff]  }
  0xc1   :  { %3155 = vmatprep.subr.bf16.mxu1 %v3510_v0 }
  0xc2   :  { %3170 = vmatpush3.bf16.msra.mxu0 %v1497_v37 }
  0xc3   :  { %3142 = vmatmul.mubr.msk.bf16.vlgmr.msra.gmra.mrb[36].mxu1 %vm119_vm2, %v1265_v35  ;;  %3185 = vmatprep.subr.bf16.mxu0 %v3510_v0 }
  0xc4   :  { %3156 = vmatpush3.bf16.msra.mxu1 %v3291_v36  ;;  %3161 = vmatprep.mubr.msk.bf16.mxu1 %vm3511_vm0, %v3510_v0 }
  0xc5   :  { %3157 = vmatprep.subr.bf16.mxu1 %v3510_v0  ;;  %3172 = vmatmul.mubr.msk.bf16.vlgmr.msra.gmra.mrb[36].mxu0 %vm119_vm2, %v1472_v39 }
  0xc6   :  { %3186 = vmatpush3.bf16.msra.mxu0 %v3298_v40  ;;  %3191 = vmatprep.mubr.msk.bf16.mxu0 %vm3511_vm0, %v3510_v0 }
  0xc7   :  { %3187 = vmatprep.subr.bf16.mxu0 %v3510_v0 }
  0xc8   :  { %3158 = vmatpush3.bf16.msra.mxu1 %v3293_v38 }
  0xc9   :  { %3159 = vmatprep.subr.bf16.mxu1 %v3510_v0 }
  0xca   :  { %3188 = vmatpush3.bf16.msra.mxu0 %v3300_v42 }
  0xcb   :  { %3189 = vmatprep.subr.bf16.mxu0 %v3510_v0 }
  0xcc   :  { %3160 = vmatpush3.bf16.msra.mxu1 %v1429_v43 }
  0xcd   :  { %3175 = vmatprep.subr.bf16.mxu1 %v3510_v0 }
  0xce   :  { %3190 = vmatpush3.bf16.msra.mxu0 %v1636_v47 }
  0xcf   :  { %3162 = vmatmul.mubr.msk.bf16.vlgmr.msra.gmra.mrb[40].mxu1 %vm119_vm2, %v1337_v45  ;;  %2868 = vmatprep.subr.bf16.mxu0 %v3306_v48 }
  0xd0   :  { %3176 = vmatpush3.bf16.msra.mxu1 %v3297_v46  ;;  %3181 = vmatprep.mubr.msk.bf16.mxu1 %vm3511_vm0, %v3510_v0 }
  0xd1   :  { %3177 = vmatprep.subr.bf16.mxu1 %v3510_v0  ;;  %3192 = vmatmul.mubr.msk.bf16.vlgmr.msra.gmra.mrb[40].mxu0 %vm119_vm2, %v1544_v50 }
  0xd2   :  { %2869 = vmatpush3.bf16.msra.mxu0 %v3307_v51 }
  0xd3   :  { %2870 = vmatprep.subr.bf16.mxu0 %v3308_v53 }
  0xd4   :  { %3178 = vmatpush3.bf16.msra.mxu1 %v3299_v49 }
  0xd5   :  { %3179 = vmatprep.subr.bf16.mxu1 %v3510_v0 }
  0xd6   :  { %2871 = vmatpush3.bf16.msra.mxu0 %v3309_v54 }
  0xd7   :  { %2872 = vmatprep.subr.bf16.mxu0 %v3310_v56 }
  0xd8   :  { %3180 = vmatpush3.bf16.msra.mxu1 %v1575_v55 }
  0xd9   :  { %3195 = vmatprep.subr.bf16.mxu1 %v3510_v0 }
  0xda   :  { %2873 = vmatpush3.bf16.msra.mxu0 %v3311_v59 }
  0xdb   :  { %3182 = vmatmul.mubr.msk.bf16.vlgmr.msra.gmra.mrb[44].mxu1 %vm119_vm2, %v1550_v57  ;;  %2874 = vmatprep.subr.bf16.mxu0 %v3312_v60 }
  0xdc   :  { %3196 = vmatpush3.bf16.msra.mxu1 %v3303_v58  ;;  %3201 = vmatprep.mubr.msk.bf16.mxu1 %vm3511_vm0, %v3510_v0 }
  0xdd   :  { %3197 = vmatprep.subr.bf16.mxu1 %v3510_v0 }
  0xde   :  { %2875 = vmatpush3.bf16.msra.mxu0 %v3313_v63 }
  0xdf   :  { %2876 = vmatprep.subr.bf16.mxu0 %v3314_v1 }
  0xe0   :  { %3198 = vmatpush3.bf16.msra.mxu1 %v3304_v61 }
  0xe1   :  { %3199 = vmatprep.subr.bf16.mxu1 %v3510_v0 }
  0xe2   :  { %2877 = vmatpush3.bf16.msra.mxu0 %v3315_v3 }
  0xe3   :  { %2878 = vmatprep.subr.bf16.mxu0 %v3316_v4 }
  0xe4   :  { %3200 = vmatpush3.bf16.msra.mxu1 %v1704_v2 }
  0xe5   :  { %2890 = vmatprep.subr.bf16.mxu1 %v3324_v6 }
  0xe6   :  { %2879 = vmatpush3.bf16.msra.mxu0 %v3317_v7 }
  0xe7   :  { %3202 = vmatmul.mubr.msk.bf16.vlgmr.msra.gmra.mrb[48].mxu1 %vm119_vm2, %v1679_v5  ;;  %2880 = vmatprep.subr.bf16.mxu0 %v3318_v9 }
  0xe8   :  { %2891 = vmatpush3.bf16.msra.mxu1 %v3325_v8 }
  0xe9   :  { %2892 = vmatprep.subr.bf16.mxu1 %v3326_v10 }
  0xea   :  { %2881 = vmatpush3.bf16.msra.mxu0 %v3319_v11 }
  0xeb   :  { %2882 = vmatprep.subr.bf16.mxu0 %v3320_v14 }
  0xec   :  { %2893 = vmatpush3.bf16.msra.mxu1 %v3327_v12 }
  0xed   :  { %2894 = vmatprep.subr.bf16.mxu1 %v3328_v13 }
  0xee   :  { %2883 = vmatpush3.bf16.msra.mxu0 %v3321_v16 }
  0xef   :  { %2912 = vmatprep.subr.bf16.mxu0 %v3342_v27  ;;  %v3345_v27 = vld [vmem:[#allocation8 + $0x108] sm:$0xff]  }
  0xf0   :  { %2895 = vmatpush3.bf16.msra.mxu1 %v3329_v15 }
  0xf1   :  { %2896 = vmatprep.subr.bf16.mxu1 %v3330_v17 }
  0xf4   :  { %2897 = vmatpush3.bf16.msra.mxu1 %v3331_v18 }
  0xf5   :  { %2898 = vmatprep.subr.bf16.mxu1 %v3332_v19 }
  0xf8   :  { %2899 = vmatpush3.bf16.msra.mxu1 %v3333_v20 }
  0xf9   :  { %2900 = vmatprep.subr.bf16.mxu1 %v3334_v21  ;;  %v3343_v21 = vld [vmem:[#allocation8 + $0x100] sm:$0xff]  }
  0xfc   :  { %2901 = vmatpush3.bf16.msra.mxu1 %v3335_v22 }
  0xfd   :  { %2902 = vmatprep.subr.bf16.mxu1 %v3336_v23  ;;  %v3344_v23 = vld [vmem:[#allocation8 + $0x148] sm:$0xff]  }
 0x100   :  { %2903 = vmatpush3.bf16.msra.mxu1 %v3337_v24 }
 0x101   :  { %2904 = vmatprep.subr.bf16.mxu1 %v3338_v25 }
 0x104   :  { %2905 = vmatpush3.bf16.msra.mxu1 %v3339_v26 }
 0x105   :  { %2934 = vmatprep.subr.bf16.mxu1 %v3360_v31 }
 0x12a   :  { %v161_v28 = vpop.f32.mrb[0].mxu1  ;;  %v291_v33 = vpop.f32.mrb[0].mxu0 }
 0x12b   :  { %v2973_v29 = vpop.f32.mrb[1].mxu1  ;;  %v2993_v34 = vpop.f32.mrb[1].mxu0 }
 0x12c   :  { %v164_v30 = vpop.f32.mrb[2].mxu1  ;;  %v294_v35 = vpop.f32.mrb[2].mxu0  ;;  %v3348_v34 = vld [vmem:[#allocation8 + $0x158] sm:$0xff]  }
 0x12d   :  { %v2974_v32 = vpop.f32.mrb[3].mxu1  ;;  %v2994_v36 = vpop.f32.mrb[3].mxu0 }
 0x12e   :  { %v3347_v32 = vld [vmem:[#allocation8 + $0x110] sm:$0xff]  }
 0x136   :  { %v222_v37 = vpop.f32.mrb[4].mxu1 }
 0x137   :  { %v223_v38 = vadd.f32 %v222_v37, %v161_v28  ;;  %v2983_v39 = vpop.f32.mrb[5].mxu1  ;;  %v3346_v28 = vld [vmem:[#allocation8 + $0x150] sm:$0xff]  }
 0x138   :  { %v225_v40 = vpop.f32.mrb[6].mxu1  ;;  %v430_v44 = vpop.f32.mrb[4].mxu0 }
 0x139   :  { %v297_v42 = vadd.f32 %v291_v33, %v223_v38  ;;  %v2984_v43 = vpop.f32.mrb[7].mxu1  ;;  %v3013_v46 = vpop.f32.mrb[5].mxu0  ;;  %v3349_v38 = vld [vmem:[#allocation8 + $0x118] sm:$0xff]   ;;  %v3350_v40 = vld [vmem:[#allocation8 + $0x160] sm:$0xff]  }
 0x13a   :  { %v433_v47 = vpop.f32.mrb[6].mxu0  ;;  %v3351_v43 = vld [vmem:[#allocation8 + $0x120] sm:$0xff]  }
 0x13b   :  { %v298_v45 = vadd.f32 %v3804_v41, %v297_v42  ;;  %v3014_v49 = vpop.f32.mrb[7].mxu0 }
 0x13d   :  { %v299_v48 = vmax.f32 %v298_v45, 0.0 }
 0x13f   :  { %v300_v50 = vpack.c.bf16 %v299_v48, %v299_v48  ;;  %v3353_v48 = vld [vmem:[#allocation8 + $0x128] sm:$0xff]  }
 0x141   :  { %301 = vst [vmem:[#allocation2] sm:$0xf] %v300_v50  ;;  %v3354_v50 = vld [vmem:[#allocation8 + $0x170] sm:$0xff]  }
 0x142   :  { %v369_v51 = vpop.f32.mrb[8].mxu1 }
 0x143   :  { %v3003_v52 = vpop.f32.mrb[9].mxu1  ;;  %v431_v53 = vadd.f32 %v430_v44, %v369_v51  ;;  %v3352_v44 = vld [vmem:[#allocation8 + $0x168] sm:$0xff]  }
 0x144   :  { %v372_v54 = vpop.f32.mrb[10].mxu1  ;;  %v576_v56 = vpop.f32.mrb[8].mxu0 }
 0x145   :  { %v3004_v55 = vpop.f32.mrb[11].mxu1  ;;  %v3033_v57 = vpop.f32.mrb[9].mxu0 }
 0x146   :  { %v579_v58 = vpop.f32.mrb[10].mxu0 }
 0x147   :  { %v3034_v59 = vpop.f32.mrb[11].mxu0  ;;  %v3356_v58 = vld [vmem:[#allocation8 + $0x178] sm:$0xff]  }
 0x14e   :  { %v498_v60 = vpop.f32.mrb[12].mxu1 }
 0x14f   :  { %v504_v61 = vadd.f32 %v498_v60, %v431_v53  ;;  %v3023_v62 = vpop.f32.mrb[13].mxu1 }
 0x150   :  { %v501_v63 = vpop.f32.mrb[14].mxu1  ;;  %v705_v3 = vpop.f32.mrb[12].mxu0 }
 0x151   :  { %v505_v1 = vadd.f32 %v3804_v41, %v504_v61  ;;  %v3024_v2 = vpop.f32.mrb[15].mxu1  ;;  %v3053_v5 = vpop.f32.mrb[13].mxu0  ;;  %v3357_v61 = vld [vmem:[#allocation8 + $0x138] sm:$0xff]  }
 0x152   :  { %v708_v6 = vpop.f32.mrb[14].mxu0 }
 0x153   :  { %v506_v4 = vmax.f32 %v505_v1, 0.0  ;;  %v3054_v8 = vpop.f32.mrb[15].mxu0 }
 0x155   :  { %v507_v7 = vpack.c.bf16 %v506_v4, %v506_v4 }
 0x157   :  { %508 = vst [vmem:[#allocation2 + $0x4] sm:$0xf] %v507_v7 }
 0x15a   :  { %v637_v9 = vpop.f32.mrb[16].mxu1 }
 0x15b   :  { %v638_v10 = vadd.f32 %v637_v9, %v576_v56  ;;  %v3043_v11 = vpop.f32.mrb[17].mxu1  ;;  %v3355_v56 = vld [vmem:[#allocation8 + $0x130] sm:$0xff]  }
 0x15c   :  { %v640_v12 = vpop.f32.mrb[18].mxu1  ;;  %v844_v16 = vpop.f32.mrb[16].mxu0  ;;  %v3361_v11 = vld [vmem:[#allocation8 + $0x180] sm:$0xff]  }
 0x15d   :  { %v711_v13 = vadd.f32 %v705_v3, %v638_v10  ;;  %v3044_v14 = vpop.f32.mrb[19].mxu1  ;;  %v3073_v20 = vpop.f32.mrb[17].mxu0 }
 0x15e   :  { %v1751_v15 = vld [vmem:[#allocation2] sm:$0xff]  ;;  %v847_v22 = vpop.f32.mrb[18].mxu0 }
 0x15f   :  { %v712_v17 = vadd.f32 %v3804_v41, %v711_v13  ;;  %v2691_v18 = vcombine.low %v1751_v15, %v1751_v15  ;;  %v2692_v19 = vcombine.high %v1751_v15, %v1751_v15  ;;  %v3074_v25 = vpop.f32.mrb[19].mxu0  ;;  %v3362_v13 = vld [vmem:[#allocation8 + $0x1c8] sm:$0xff]   ;;  %v3365_v22 = vld [vmem:[#allocation8 + $0x190] sm:$0xff]  }
 0x161   :  { %v713_v24 = vmax.f32 %v712_v17, 0.0  ;;  %2334 = vmatprep.mubr.bf16.mxu0 %v2692_v19  ;;  %v3363_v17 = vld [vmem:[#allocation8 + $0x188] sm:$0xff]  }
 0x162   :  { %2335 = vmatmul.mubr.bf16.vlgmr.msra.gmra.mrb[44].mxu0 %v2691_v18  ;;  %v3364_v18 = vld [vmem:[#allocation8 + $0x1d0] sm:$0xff]  }
 0x163   :  { %v714_v26 = vpack.c.bf16 %v713_v24, %v713_v24  ;;  %2913 = vmatpush3.bf16.msra.mxu0 %v3343_v21  ;;  %v3366_v24 = vld [vmem:[#allocation8 + $0x1d8] sm:$0xff]  }
 0x164   :  { %2914 = vmatprep.subr.bf16.mxu0 %v3344_v23 }
 0x165   :  { %715 = vst [vmem:[#allocation2 + $0x8] sm:$0xf] %v714_v26 }
 0x166   :  { %v783_v29 = vpop.f32.mrb[20].mxu1 }
 0x167   :  { %v3063_v30 = vpop.f32.mrb[21].mxu1  ;;  %v845_v31 = vadd.f32 %v844_v16, %v783_v29  ;;  %2915 = vmatpush3.bf16.msra.mxu0 %v3345_v27 }
 0x168   :  { %v786_v33 = vpop.f32.mrb[22].mxu1  ;;  %2916 = vmatprep.subr.bf16.mxu0 %v3346_v28  ;;  %v990_v36 = vpop.f32.mrb[20].mxu0  ;;  %v3367_v28 = vld [vmem:[#allocation8 + $0x198] sm:$0xff]   ;;  %v3368_v30 = vld [vmem:[#allocation8 + $0x1e0] sm:$0xff]  }
 0x169   :  { %v3064_v35 = vpop.f32.mrb[23].mxu1  ;;  %v3093_v37 = vpop.f32.mrb[21].mxu0  ;;  %v3370_v33 = vld [vmem:[#allocation8 + $0x1e8] sm:$0xff]  }
 0x16a   :  { %v993_v39 = vpop.f32.mrb[22].mxu0  ;;  %v3371_v37 = vld [vmem:[#allocation8 + $0x1a8] sm:$0xff]  }
 0x16b   :  { %2917 = vmatpush3.bf16.msra.mxu0 %v3347_v32  ;;  %v3094_v42 = vpop.f32.mrb[23].mxu0  ;;  %v3369_v32 = vld [vmem:[#allocation8 + $0x1a0] sm:$0xff]   ;;  %v3372_v39 = vld [vmem:[#allocation8 + $0x1f0] sm:$0xff]  }
 0x16c   :  { %2918 = vmatprep.subr.bf16.mxu0 %v3348_v34 }
 0x16f   :  { %2919 = vmatpush3.bf16.msra.mxu0 %v3349_v38 }
 0x170   :  { %2920 = vmatprep.subr.bf16.mxu0 %v3350_v40 }
 0x172   :  { %v912_v45 = vpop.f32.mrb[24].mxu1 }
 0x173   :  { %v918_v46 = vadd.f32 %v912_v45, %v845_v31  ;;  %v3083_v47 = vpop.f32.mrb[25].mxu1  ;;  %2921 = vmatpush3.bf16.msra.mxu0 %v3351_v43 }
 0x174   :  { %v915_v49 = vpop.f32.mrb[26].mxu1  ;;  %2922 = vmatprep.subr.bf16.mxu0 %v3352_v44  ;;  %v1119_v53 = vpop.f32.mrb[24].mxu0 }
 0x175   :  { %v919_v51 = vadd.f32 %v3804_v41, %v918_v46  ;;  %v3084_v52 = vpop.f32.mrb[27].mxu1  ;;  %v3113_v55 = vpop.f32.mrb[25].mxu0  ;;  %v3373_v46 = vld [vmem:[#allocation8 + $0x1b0] sm:$0xff]  }
 0x176   :  { %v1122_v57 = vpop.f32.mrb[26].mxu0 }
 0x177   :  { %v920_v54 = vmax.f32 %v919_v51, 0.0  ;;  %2923 = vmatpush3.bf16.msra.mxu0 %v3353_v48  ;;  %v3114_v60 = vpop.f32.mrb[27].mxu0  ;;  %v3374_v48 = vld [vmem:[#allocation8 + $0x1f8] sm:$0xff]  }
 0x178   :  { %2924 = vmatprep.subr.bf16.mxu0 %v3354_v50  ;;  %v3375_v51 = vld [vmem:[#allocation8 + $0x1b8] sm:$0xff]  }
 0x179   :  { %v921_v59 = vpack.c.bf16 %v920_v54, %v920_v54 }
 0x17b   :  { %922 = vst [vmem:[#allocation2 + $0xc] sm:$0xf] %v921_v59  ;;  %2925 = vmatpush3.bf16.msra.mxu0 %v3355_v56 }
 0x17c   :  { %2926 = vmatprep.subr.bf16.mxu0 %v3356_v58 }
 0x17e   :  { %v1051_v62 = vpop.f32.mrb[28].mxu1 }
 0x17f   :  { %v1052_v63 = vadd.f32 %v1051_v62, %v990_v36  ;;  %v3103_v1 = vpop.f32.mrb[29].mxu1  ;;  %2927 = vmatpush3.bf16.msra.mxu0 %v3357_v61 }
 0x180   :  { %v1054_v2 = vpop.f32.mrb[30].mxu1  ;;  %3205 = vmatprep.subr.bf16.mxu0 %v3510_v0  ;;  %v1258_v6 = vpop.f32.mrb[28].mxu0 }
 0x181   :  { %v1125_v3 = vadd.f32 %v1119_v53, %v1052_v63  ;;  %v3104_v4 = vpop.f32.mrb[31].mxu1  ;;  %v3133_v10 = vpop.f32.mrb[29].mxu0 }
 0x182   :  { %v1752_v5 = vld [vmem:[#allocation2 + $0x8] sm:$0xff]  ;;  %v1261_v12 = vpop.f32.mrb[30].mxu0 }
 0x183   :  { %v1126_v7 = vadd.f32 %v3804_v41, %v1125_v3  ;;  %v2693_v8 = vcombine.low %v1752_v5, %v1752_v5  ;;  %v2694_v9 = vcombine.high %v1752_v5, %v1752_v5  ;;  %v3134_v15 = vpop.f32.mrb[31].mxu0 }
 0x185   :  { %v1127_v14 = vmax.f32 %v1126_v7, 0.0  ;;  %2374 = vmatprep.mubr.bf16.mxu1 %v2694_v9 }
 0x186   :  { %2375 = vmatmul.mubr.bf16.vlgmr.msra.gmra.mrb[52].mxu1 %v2693_v8 }
 0x187   :  { %v1128_v16 = vpack.c.bf16 %v1127_v14, %v1127_v14  ;;  %2935 = vmatpush3.bf16.msra.mxu1 %v3361_v11 }
 0x188   :  { %2936 = vmatprep.subr.bf16.mxu1 %v3362_v13 }
 0x189   :  { %1129 = vst [vmem:[#allocation2 + $0x10] sm:$0xf] %v1128_v16 }
 0x18a   :  { %v1197_v19 = vpop.f32.mrb[32].mxu1 }
 0x18b   :  { %v3123_v20 = vpop.f32.mrb[33].mxu1  ;;  %v1259_v21 = vadd.f32 %v1258_v6, %v1197_v19  ;;  %2937 = vmatpush3.bf16.msra.mxu1 %v3363_v17 }
 0x18c   :  { %v1200_v23 = vpop.f32.mrb[34].mxu1  ;;  %2938 = vmatprep.subr.bf16.mxu1 %v3364_v18  ;;  %v1404_v26 = vpop.f32.mrb[32].mxu0 }
 0x18d   :  { %v3124_v25 = vpop.f32.mrb[35].mxu1  ;;  %v3153_v27 = vpop.f32.mrb[33].mxu0  ;;  %v3380_v23 = vld [vmem:[#allocation9 + $0x10] sm:$0xff]  }
 0x18e   :  { %v1407_v29 = vpop.f32.mrb[34].mxu0  ;;  %v3383_v25 = vld [vmem:[#allocation9 + $0x28] sm:$0xff]   ;;  %v3385_v27 = vld [vmem:[#allocation9 + $0x38] sm:$0xff]  }
 0x18f   :  { %2939 = vmatpush3.bf16.msra.mxu1 %v3365_v22  ;;  %v3154_v31 = vpop.f32.mrb[35].mxu0  ;;  %v3379_v22 = vld [vmem:[#allocation9 + $0x8] sm:$0xff]  }
 0x190   :  { %2940 = vmatprep.subr.bf16.mxu1 %v3366_v24  ;;  %v3382_v24 = vld [vmem:[#allocation9 + $0x20] sm:$0xff]  }
 0x193   :  { %2941 = vmatpush3.bf16.msra.mxu1 %v3367_v28 }
 0x194   :  { %2942 = vmatprep.subr.bf16.mxu1 %v3368_v30 }
 0x196   :  { %v1326_v34 = vpop.f32.mrb[36].mxu1 }
 0x197   :  { %v1332_v35 = vadd.f32 %v1326_v34, %v1259_v21  ;;  %v3143_v36 = vpop.f32.mrb[37].mxu1  ;;  %2943 = vmatpush3.bf16.msra.mxu1 %v3369_v32  ;;  %v3378_v21 = vld [vmem:[#allocation9] sm:$0xff]  }
 0x198   :  { %v1329_v38 = vpop.f32.mrb[38].mxu1  ;;  %2944 = vmatprep.subr.bf16.mxu1 %v3370_v33  ;;  %v1533_v43 = vpop.f32.mrb[36].mxu0  ;;  %v2690_v33 = vld [vmem:[%s3846_s4] ss:$0 sm:$0xff] }
 0x199   :  { %v1333_v40 = vadd.f32 %v3804_v41, %v1332_v35  ;;  %v3144_v42 = vpop.f32.mrb[39].mxu1  ;;  %v3173_v45 = vpop.f32.mrb[37].mxu0 }
 0x19a   :  { %v1536_v47 = vpop.f32.mrb[38].mxu0 }
 0x19b   :  { %v1334_v44 = vmax.f32 %v1333_v40, 0.0  ;;  %2945 = vmatpush3.bf16.msra.mxu1 %v3371_v37  ;;  %v3174_v50 = vpop.f32.mrb[39].mxu0 }
 0x19c   :  { %2946 = vmatprep.subr.bf16.mxu1 %v3372_v39 }
 0x19d   :  { %v1335_v49 = vpack.c.bf16 %v1334_v44, %v1334_v44 }
 0x19f   :  { %1336 = vst [vmem:[#allocation2 + $0x14] sm:$0xf] %v1335_v49  ;;  %2947 = vmatpush3.bf16.msra.mxu1 %v3373_v46 }
 0x1a0   :  { %2948 = vmatprep.subr.bf16.mxu1 %v3374_v48 }
 0x1a2   :  { %v1465_v52 = vpop.f32.mrb[40].mxu1 }
 0x1a3   :  { %v1466_v53 = vadd.f32 %v1465_v52, %v1404_v26  ;;  %v3163_v54 = vpop.f32.mrb[41].mxu1  ;;  %2949 = vmatpush3.bf16.msra.mxu1 %v3375_v51  ;;  %v3384_v26 = vld [vmem:[#allocation9 + $0x30] sm:$0xff]  }
 0x1a4   :  { %v1468_v55 = vpop.f32.mrb[42].mxu1  ;;  %v1672_v59 = vpop.f32.mrb[40].mxu0 }
 0x1a5   :  { %v1539_v56 = vadd.f32 %v1533_v43, %v1466_v53  ;;  %v3164_v57 = vpop.f32.mrb[43].mxu1  ;;  %v3193_v63 = vpop.f32.mrb[41].mxu0  ;;  %v2763_v55 = vld [vmem:[%s3848_s6] ss:$0 sm:$0xff] }
 0x1a6   :  { %v1753_v58 = vld [vmem:[#allocation2 + $0x10] sm:$0xff]  ;;  %v1675_v1 = vpop.f32.mrb[42].mxu0 }
 0x1a7   :  { %v1540_v60 = vadd.f32 %v3804_v41, %v1539_v56  ;;  %v2695_v61 = vcombine.low %v1753_v58, %v1753_v58  ;;  %v2696_v62 = vcombine.high %v1753_v58, %v1753_v58  ;;  %v3194_v3 = vpop.f32.mrb[43].mxu0 }
 0x1a9   :  { %v1541_v2 = vmax.f32 %v1540_v60, 0.0  ;;  %2414 = vmatprep.mubr.bf16.mxu0 %v2696_v62 }
 0x1aa   :  { %2415 = vmatmul.mubr.bf16.vlgmr.msra.gmra.mrb[48].mxu0 %v2695_v61 }
 0x1ab   :  { %v1542_v4 = vpack.c.bf16 %v1541_v2, %v1541_v2  ;;  %3221 = vmatprep.mubr.msk.bf16.mxu0 %vm3511_vm0, %v3510_v0  ;;  %3206 = vmatpush3.bf16.msra.mxu0 %v3378_v21 }
 0x1ac   :  { %3207 = vmatprep.subr.bf16.mxu0 %v3510_v0 }
 0x1ad   :  { %1543 = vst [vmem:[#allocation2 + $0x18] sm:$0xf] %v1542_v4 }
 0x1ae   :  { %v1611_v5 = vpop.f32.mrb[44].mxu1 }
 0x1af   :  { %v3183_v6 = vpop.f32.mrb[45].mxu1  ;;  %v1673_v7 = vadd.f32 %v1672_v59, %v1611_v5  ;;  %3208 = vmatpush3.bf16.msra.mxu0 %v3379_v22 }
 0x1b0   :  { %v1614_v8 = vpop.f32.mrb[46].mxu1  ;;  %3209 = vmatprep.subr.bf16.mxu0 %v3510_v0 }
 0x1b1   :  { %v3184_v9 = vpop.f32.mrb[47].mxu1 }
 0x1b3   :  { %3210 = vmatpush3.bf16.msra.mxu0 %v3380_v23 }
 0x1b4   :  { %3211 = vmatprep.subr.bf16.mxu0 %v3510_v0 }
 0x1ba   :  { %v1740_v10 = vpop.f32.mrb[48].mxu1 }
 0x1bb   :  { %v1746_v11 = vadd.f32 %v1740_v10, %v1673_v7  ;;  %v3203_v12 = vpop.f32.mrb[49].mxu1 }
 0x1bc   :  { %v1743_v13 = vpop.f32.mrb[50].mxu1 }
 0x1bd   :  { %v1747_v14 = vadd.f32 %v3804_v41, %v1746_v11  ;;  %v3204_v15 = vpop.f32.mrb[51].mxu1  ;;  %v3381_v41 = vld [vmem:[#allocation9 + $0x18] sm:$0xff]  }
 0x1be   :  { %3212 = vmatpush3.bf16.msra.mxu0 %v3381_v41 }
 0x1bf   :  { %v1748_v16 = vmax.f32 %v1747_v14, 0.0  ;;  %3213 = vmatprep.subr.bf16.mxu0 %v3510_v0 }
 0x1c1   :  { %v1749_v17 = vpack.c.bf16 %v1748_v16, %v1748_v16 }
 0x1c2   :  { %3214 = vmatpush3.bf16.msra.mxu0 %v3382_v24 }
 0x1c3   :  { %1750 = vst [vmem:[#allocation2 + $0x1c] sm:$0xf] %v1749_v17  ;;  %3215 = vmatprep.subr.bf16.mxu0 %v3510_v0 }
 0x1c6   :  { %3216 = vmatpush3.bf16.msra.mxu0 %v3383_v25 }
 0x1c7   :  { %3217 = vmatprep.subr.bf16.mxu0 %v3510_v0 }
 0x1ca   :  { %v1754_v18 = vld [vmem:[#allocation2 + $0x18] sm:$0xff]  ;;  %3218 = vmatpush3.bf16.msra.mxu0 %v3384_v26 }
 0x1cb   :  { %v2697_v19 = vcombine.low %v1754_v18, %v1754_v18  ;;  %v2698_v20 = vcombine.high %v1754_v18, %v1754_v18  ;;  %3219 = vmatprep.subr.bf16.mxu0 %v3510_v0 }
 0x1cd   :  { %2454 = vmatprep.mubr.bf16.mxu1 %v2698_v20 }
 0x1ce   :  { %2455 = vmatmul.mubr.bf16.vlgmr.msra.gmra.mrb[56].mxu1 %v2697_v19  ;;  %3220 = vmatpush3.bf16.msra.mxu0 %v3385_v27 }
 0x235   :  { %v2884_v28 = vpop.f32.mrb[44].mxu0 }
 0x236   :  { %v2885_v29 = vpop.f32.mrb[45].mxu0 }
 0x237   :  { %v2886_v30 = vadd.f32 %v2885_v29, %v2884_v28  ;;  %v2887_v31 = vpop.f32.mrb[46].mxu0 }
 0x238   :  { %v2888_v32 = vpop.f32.mrb[47].mxu0 }
 0x239   :  { %v2337_v36 = vadd.f32 %v2886_v30, %v2690_v33 }
 0x259   :  { %v2906_v34 = vpop.f32.mrb[52].mxu1 }
 0x25a   :  { %v2907_v35 = vpop.f32.mrb[53].mxu1 }
 0x25b   :  { %v2908_v37 = vadd.f32 %v2907_v35, %v2906_v34  ;;  %v2909_v38 = vpop.f32.mrb[54].mxu1 }
 0x25c   :  { %v2910_v39 = vpop.f32.mrb[55].mxu1 }
 0x25d   :  { %v2377_v40 = vadd.f32 %v2908_v37, %v2337_v36 }
 0x27d   :  { %v2928_v42 = vpop.f32.mrb[48].mxu0 }
 0x27e   :  { %v2929_v0 = vpop.f32.mrb[49].mxu0 }
 0x27f   :  { %v2930_v43 = vadd.f32 %v2929_v0, %v2928_v42  ;;  %v2931_v44 = vpop.f32.mrb[50].mxu0 }
 0x280   :  { %v2932_v45 = vpop.f32.mrb[51].mxu0 }
 0x281   :  { %v2417_v46 = vadd.f32 %v2930_v43, %v2377_v40 }
 0x2a1   :  { %v2950_v47 = vpop.f32.mrb[56].mxu1 }
 0x2a2   :  { %v2951_v48 = vpop.f32.mrb[57].mxu1 }
 0x2a3   :  { %v2952_v49 = vadd.f32 %v2951_v48, %v2950_v47  ;;  %v2953_v50 = vpop.f32.mrb[58].mxu1 }
 0x2a4   :  { %v2954_v51 = vpop.f32.mrb[59].mxu1 }
 0x2a5   :  { %v2457_v52 = vadd.f32 %v2952_v49, %v2417_v46 }
 0x2a7   :  { %v2462_v53 = vmax.f32 %v2457_v52, 0.0 }
 0x2a9   :  { %v2463_v54 = vpack.c.bf16 %v2462_v53, %v2462_v53 }
 0x2ab   :  { %3222 = vmatmul.mubr.bf16.vlgmr.msra.gmra.mrb[52].mxu0 %v2463_v54 }
 0x37e   :  { %v2569_v56 = vpop.f32.mrb[52].mxu0 }
 0x37f   :  { %v2570_v57 = vadd.f32 %v2763_v55, %v2569_v56  ;;  %v3223_v58 = vpop.f32.mrb[53].mxu0 }
 0x380   :  { %v2572_v59 = vpop.f32.mrb[54].mxu0 }
 0x381   :  { %2575 = vst [vmem:[#allocation11] sm:$0xff] %v2570_v57  ;;  %v3224_v60 = vpop.f32.mrb[55].mxu0 }
 0x382   :  { %3485 = shalt.err (!%p3482_p8)
}
 0x383   :  { %s3486_s6 = scalar_lea.hbm %s3849_s7, 128 }
 0x384   :  { %p3487_p9 = scmp.ne.s32.totalorder %s3849_s7, %s3486_s6  ;;  %p3490_p10 = scmp.lt.u32.totalorder %s3486_s6, %s3849_s7 }
 0x386   :  { %p3492_p11 = pnand %p3490_p10, %p3487_p9 }
 0x388   :  { %3495 = shalt.err (!%p3492_p11)
}
 0x389   :  { %2585 = dma.vmem_to_hbm [thread:$0]  %s2583_s29, 128, %s3849_s7, [#allocation5]  }
 0x38a   :  { %3502 = dma.done.wait [#allocation5], 128  }
 0x38b   :  { %3503 = vsyncadd [#allocation5], 4294967168 }
 0x38c   :  { %2589 = vsyncpa [#allocation4], 1 }
 0x38d   :  { %2590 = vsyncpa [#allocation7], 1 }
 0x38e   :  { %2591 = vsyncpa [#allocation10], 1 }
 0x38f   :  { %2592 = vsyncpa [#allocation5], 1 }

</bundles_post_ra>
